<compile_context>
chip_gen: v7x
topology: tpu7x:2x2x1
jax: 0.10.0
libtpu: 0.0.40
codegen_flags: <defaults>
</compile_context>

<pallas_src>
import jax
import jax.numpy as jnp
from jax import lax
from jax.experimental import pallas as pl

B = 2                        # real batch
BP = 16                      # batch padded to a full bf16 (16-sublane) MXU tile
IMG_C, IMG_H, IMG_W = 3, 32, 32
I = 128                      # vision_embed_dim (shrunk from 512 for a small example)
J = 12                       # portion_dim
O = 128                      # Bilinear output_dim (shrunk from 512)
L = 1 * IMG_H * IMG_W        # nn.Linear(output_dim, 1*32*32) -> 1024
CH_OUT = 3                   # Conv2d(1, 3, ...)
N_CLASSES = 5                # CustomMobileNet(5)


# ----------------------------------------------------------------------------
# Fused kernel:
#   Bilinear(I,J,O) -> [Linear(O,1024) + view + Conv2d(1,3,3,p=1) + BN] (folded into one
#   [O, 3*1024] matmul at init) -> ReLU -> global-avg-pool -> Linear(3, 5).
#   Two MXU matmuls + a ReLU + three lane reductions; everything lane-dense.
# ----------------------------------------------------------------------------
def venezia_fused_kernel(x1_ref, x2_ref, wb_ref, wlc_ref, blc_ref,
                         clsw_ref, clsb_ref, out_ref):
    # ---- Bilinear as one MXU matmul over K = J*I (outer-product trick) ----
    x1 = x1_ref[...]                                                     # [BP, I] f32
    x2 = x2_ref[...]                                                     # [BP, J] f32
    # f32 multiply (v5e-friendly), per-slab bf16 cast before the concat.
    x12 = jnp.concatenate(
        [(x1 * x2[:, j:j + 1]).astype(jnp.bfloat16) for j in range(J)], axis=1)  # [BP, J*I] bf16
    y = jnp.dot(x12, wb_ref[...], preferred_element_type=jnp.float32)   # [BP, O] f32
    # (bilinear bias is folded into blc at init — no bias add here)

    # ---- Linear + view(1,32,32) + Conv2d(1,3,k3,p1) + BN, all pre-folded into wlc/blc ----
    a = jnp.dot(y.astype(jnp.bfloat16), wlc_ref[...],
                preferred_element_type=jnp.float32) + blc_ref[...]      # [BP, 3*L] f32
    a = jnp.maximum(a, 0.0)                                              # ReLU

    # ---- global-avg-pool per channel + Linear(3 -> 5) head ----
    clsw = clsw_ref[...]                                                 # [3, 5]
    inv_hw = 1.0 / float(L)
    logits = jnp.zeros((BP, N_CLASSES), jnp.float32)
    for c in range(CH_OUT):
        pooled = jnp.sum(a[:, c * L:(c + 1) * L], axis=1, keepdims=True) * inv_hw  # [BP, 1]
        logits = logits + pooled * clsw[c:c + 1, :]
    out_ref[...] = logits + clsb_ref[...]                                # [BP, 5]


def venezia_fused_call(x1p, x2p, p):
    flops = 2 * BP * (J * I) * O + 2 * BP * O * (CH_OUT * L)
    bytes_accessed = int(
        x1p.size * 4 + x2p.size * 4
        + p["wb"].size * 2 + p["wlc"].size * 2 + p["blc"].size * 4
        + p["cls_w"].size * 4 + p["cls_b"].size * 4
        + BP * N_CLASSES * 4)
    return pl.pallas_call(
        venezia_fused_kernel,
        out_shape=jax.ShapeDtypeStruct((BP, N_CLASSES), jnp.float32),
        grid=(1,),
        in_specs=[
            pl.BlockSpec((BP, I), lambda i: (0, 0)),                     # x1 (padded batch)
            pl.BlockSpec((BP, J), lambda i: (0, 0)),                     # x2 (padded batch)
            pl.BlockSpec((J * I, O), lambda i: (0, 0)),                  # bilinear weight (bf16)
            pl.BlockSpec((O, CH_OUT * L), lambda i: (0, 0)),             # linear+conv+BN folded weight (bf16)
            pl.BlockSpec((1, CH_OUT * L), lambda i: (0, 0)),             # folded bias (f32)
            pl.BlockSpec((CH_OUT, N_CLASSES), lambda i: (0, 0)),         # classifier weight
            pl.BlockSpec((1, N_CLASSES), lambda i: (0, 0)),              # classifier bias
        ],
        out_specs=pl.BlockSpec((BP, N_CLASSES), lambda i: (0, 0)),
        cost_estimate=pl.CostEstimate(flops=flops, transcendentals=0,
                                      bytes_accessed=bytes_accessed),
    )(x1p, x2p, p["wb"], p["wlc"], p["blc"], p["cls_w"], p["cls_b"])


# ----------------------------------------------------------------------------
# Parameters (deterministic init — synthetic, no checkpoint load).
# ----------------------------------------------------------------------------
def init_params():
    key = jax.random.PRNGKey(0)
    ks = jax.random.split(key, 10)
    # TODO(synk): CLIP ViT-B/32 encode_image replaced by a deterministic
    # global-avg-pool + Linear(3 -> I) stub (no pretrained checkpoint available).
    enc_w = 0.05 * jax.random.normal(ks[0], (IMG_C, I), jnp.float32)
    enc_b = 0.01 * jax.random.normal(ks[1], (I,), jnp.float32)

    w_bil = 0.05 * jax.random.normal(ks[2], (O, I, J), jnp.float32)      # torch Bilinear weight (out, in1, in2)
    # kernel layout: wb[j*I + i, o] = w_bil[o, i, j]  (bf16 -> single-pass MXU)
    wb = jnp.transpose(w_bil, (2, 1, 0)).reshape(J * I, O).astype(jnp.bfloat16)
    bb = 0.01 * jax.random.normal(ks[3], (1, O), jnp.float32)

    wl = 0.05 * jax.random.normal(ks[4], (O, L), jnp.float32)            # pre-transposed: z = y @ wl
    bl = 0.01 * jax.random.normal(ks[5], (1, L), jnp.float32)

    conv_w = 0.3 * jax.random.normal(ks[6], (CH_OUT, 1, 3, 3), jnp.float32)
    conv_b = 0.01 * jax.random.normal(ks[7], (CH_OUT,), jnp.float32)

    # TODO(synk): BatchNorm2d implemented in eval mode with deterministic running
    # stats (PyTorch's default train() mode would use per-batch statistics).
    gamma = 1.0 + 0.1 * jnp.arange(CH_OUT, dtype=jnp.float32)
    beta = 0.05 * jnp.arange(CH_OUT, dtype=jnp.float32)
    run_mean = 0.1 * jnp.arange(CH_OUT, dtype=jnp.float32)
    run_var = 1.0 + 0.2 * jnp.arange(CH_OUT, dtype=jnp.float32)
    eps = 1e-5
    bn_scale = gamma / jnp.sqrt(run_var + eps)
    bn_shift = beta - run_mean * bn_scale

    # ---- Folds (all exact, done in f32 at init) ----
    # 1) Bilinear bias through the Linear: bl' = bb @ wl + bl.
    bl_fold = bb @ wl + bl                                               # [1, L]
    # 2) BN into the conv: Kf = conv_w * bn_scale, convb_f = conv_b * bn_scale + bn_shift.
    kf = conv_w * bn_scale[:, None, None, None]                          # [3, 1, 3, 3]
    convb_f = conv_b * bn_scale + bn_shift                               # [3]
    # 3) Conv into the Linear: apply the (BN-folded) conv to every row of wl and to bl'.
    wl_img = wl.reshape(O, 1, IMG_H, IMG_W)
    wlc = lax.conv_general_dilated(wl_img, kf, (1, 1), "SAME",
                                   dimension_numbers=("NCHW", "OIHW", "NCHW"))
    wlc = wlc.reshape(O, CH_OUT * L).astype(jnp.bfloat16)                # [O, 3*L] bf16
    bl_img = bl_fold.reshape(1, 1, IMG_H, IMG_W)
    blc = lax.conv_general_dilated(bl_img, kf, (1, 1), "SAME",
                                   dimension_numbers=("NCHW", "OIHW", "NCHW"))
    blc = (blc + convb_f[None, :, None, None]).reshape(1, CH_OUT * L)    # [1, 3*L] f32

    # TODO(synk): CustomMobileNet(5) (external, undefined here) replaced by a
    # global-average-pool + Linear(3 -> 5) classification head.
    cls_w = 0.1 * jax.random.normal(ks[8], (CH_OUT, N_CLASSES), jnp.float32)
    cls_b = 0.01 * jax.random.normal(ks[9], (1, N_CLASSES), jnp.float32)

    return dict(enc_w=enc_w, enc_b=enc_b, wb=wb, bb=bb, wl=wl, bl=bl,
                conv_w=conv_w, conv_b=conv_b, bn_scale=bn_scale, bn_shift=bn_shift,
                wlc=wlc, blc=blc, cls_w=cls_w, cls_b=cls_b)


# ----------------------------------------------------------------------------
# Forward pass (tiny glue in plain JAX, everything else in the fused kernel).
# ----------------------------------------------------------------------------
def venezia_forward(params, x_1, x_2):
    # image_encoder stub (see TODO in init_params).
    feats = jnp.mean(x_1, axis=(2, 3))                                   # [B, 3]
    x1_emb = feats @ params["enc_w"] + params["enc_b"]                   # [B, I]
    # Pad batch to 16 sublanes so bf16 MXU operands are full packed tiles.
    x1p = jnp.pad(x1_emb.astype(jnp.float32), ((0, BP - B), (0, 0)))
    x2p = jnp.pad(x_2.astype(jnp.float32), ((0, BP - B), (0, 0)))
    out = venezia_fused_call(x1p, x2p, params)                           # [BP, 5]
    return out[:B]


def venezia_reference(params, x_1, x_2):
    """Pure-JAX reference (f32, HIGHEST), un-folded, for correctness checking."""
    feats = jnp.mean(x_1, axis=(2, 3))
    x1_emb = feats @ params["enc_w"] + params["enc_b"]
    w_jio = params["wb"].astype(jnp.float32).reshape(J, I, O)
    y = jnp.einsum("bi,bj,jio->bo", x1_emb, x_2, w_jio,
                   precision=lax.Precision.HIGHEST) + params["bb"]
    z = jnp.dot(y, params["wl"], precision=lax.Precision.HIGHEST) + params["bl"]
    img = z.reshape(B, 1, IMG_H, IMG_W)
    conv = lax.conv_general_dilated(img, params["conv_w"], (1, 1), "SAME",
                                    dimension_numbers=("NCHW", "OIHW", "NCHW"))
    conv = conv + params["conv_b"][None, :, None, None]
    conv = conv * params["bn_scale"][None, :, None, None] + params["bn_shift"][None, :, None, None]
    conv = jnp.maximum(conv, 0.0)
    pooled = jnp.mean(conv, axis=(2, 3))                                 # [B, 3]
    return pooled @ params["cls_w"] + params["cls_b"]


if __name__ == "__main__":
    params = init_params()
    key = jax.random.PRNGKey(0)
    k1, k2 = jax.random.split(key)
    x_1 = jax.random.normal(k1, (B, IMG_C, IMG_H, IMG_W), jnp.float32)   # image input
    x_2 = jax.random.normal(k2, (B, J), jnp.float32)                     # portion input

    fwd = jax.jit(venezia_forward)
    out = jax.block_until_ready(fwd(params, x_1, x_2))

    ref = jax.block_until_ready(venezia_reference(params, x_1, x_2))
    assert out.shape == (B, N_CLASSES), out.shape
    assert bool(jnp.all(jnp.isfinite(out)))
    assert jnp.allclose(out, ref, rtol=2e-2, atol=2e-2), (out, ref)

    print("KERNEL_OK")
</pallas_src>

<mosaic_0001>
module attributes {stable_mosaic.version = 11 : i64} {
  func.func @venezia_fused_kernel(%arg0: i32, %arg1: memref<16x128xf32, #tpu.memory_space<vmem>>, %arg2: memref<16x12xf32, #tpu.memory_space<vmem>>, %arg3: memref<1536x128xbf16, #tpu.memory_space<vmem>>, %arg4: memref<128x3072xbf16, #tpu.memory_space<vmem>>, %arg5: memref<1x3072xf32, #tpu.memory_space<vmem>>, %arg6: memref<3x5xf32, #tpu.memory_space<vmem>>, %arg7: memref<1x5xf32, #tpu.memory_space<vmem>>, %arg8: memref<16x5xf32, #tpu.memory_space<vmem>>) attributes {dimension_semantics = [#tpu.dimension_semantics<arbitrary>], iteration_bounds = array<i64: 1>, scalar_prefetch = 0 : i64, scratch_operands = 0 : i64, tpu.core_type = #tpu.core_type<tc>, window_params = [{pipeline_mode = #tpu.pipeline_mode<synchronous>, transform_indices = @transform_0, window_bounds = array<i64: 16, 128>}, {pipeline_mode = #tpu.pipeline_mode<synchronous>, transform_indices = @transform_1, window_bounds = array<i64: 16, 12>}, {pipeline_mode = #tpu.pipeline_mode<synchronous>, transform_indices = @transform_2, window_bounds = array<i64: 1536, 128>}, {pipeline_mode = #tpu.pipeline_mode<synchronous>, transform_indices = @transform_3, window_bounds = array<i64: 128, 3072>}, {pipeline_mode = #tpu.pipeline_mode<synchronous>, transform_indices = @transform_4, window_bounds = array<i64: 1, 3072>}, {pipeline_mode = #tpu.pipeline_mode<synchronous>, transform_indices = @transform_5, window_bounds = array<i64: 3, 5>}, {pipeline_mode = #tpu.pipeline_mode<synchronous>, transform_indices = @transform_6, window_bounds = array<i64: 1, 5>}, {pipeline_mode = #tpu.pipeline_mode<synchronous>, transform_indices = @transform_7, window_bounds = array<i64: 16, 5>}]} {
    %c0 = arith.constant 0 : index
    %c0_0 = arith.constant 0 : index
    %0 = vector.load %arg1[%c0, %c0_0] : memref<16x128xf32, #tpu.memory_space<vmem>>, vector<16x128xf32>
    %c0_1 = arith.constant 0 : index
    %c0_2 = arith.constant 0 : index
    %1 = vector.load %arg2[%c0_1, %c0_2] : memref<16x12xf32, #tpu.memory_space<vmem>>, vector<16x12xf32>
    %2 = vector.extract_strided_slice %1 {offsets = [0, 0], sizes = [16, 1], strides = [1, 1]} : vector<16x12xf32> to vector<16x1xf32>
    %3 = vector.broadcast %2 : vector<16x1xf32> to vector<16x128xf32>
    %4 = arith.mulf %0, %3 : vector<16x128xf32>
    %5 = arith.truncf %4 : vector<16x128xf32> to vector<16x128xbf16>
    %6 = vector.extract_strided_slice %1 {offsets = [0, 1], sizes = [16, 1], strides = [1, 1]} : vector<16x12xf32> to vector<16x1xf32>
    %7 = vector.broadcast %6 : vector<16x1xf32> to vector<16x128xf32>
    %8 = arith.mulf %0, %7 : vector<16x128xf32>
    %9 = arith.truncf %8 : vector<16x128xf32> to vector<16x128xbf16>
    %10 = vector.extract_strided_slice %1 {offsets = [0, 2], sizes = [16, 1], strides = [1, 1]} : vector<16x12xf32> to vector<16x1xf32>
    %11 = vector.broadcast %10 : vector<16x1xf32> to vector<16x128xf32>
    %12 = arith.mulf %0, %11 : vector<16x128xf32>
    %13 = arith.truncf %12 : vector<16x128xf32> to vector<16x128xbf16>
    %14 = vector.extract_strided_slice %1 {offsets = [0, 3], sizes = [16, 1], strides = [1, 1]} : vector<16x12xf32> to vector<16x1xf32>
    %15 = vector.broadcast %14 : vector<16x1xf32> to vector<16x128xf32>
    %16 = arith.mulf %0, %15 : vector<16x128xf32>
    %17 = arith.truncf %16 : vector<16x128xf32> to vector<16x128xbf16>
    %18 = vector.extract_strided_slice %1 {offsets = [0, 4], sizes = [16, 1], strides = [1, 1]} : vector<16x12xf32> to vector<16x1xf32>
    %19 = vector.broadcast %18 : vector<16x1xf32> to vector<16x128xf32>
    %20 = arith.mulf %0, %19 : vector<16x128xf32>
    %21 = arith.truncf %20 : vector<16x128xf32> to vector<16x128xbf16>
    %22 = vector.extract_strided_slice %1 {offsets = [0, 5], sizes = [16, 1], strides = [1, 1]} : vector<16x12xf32> to vector<16x1xf32>
    %23 = vector.broadcast %22 : vector<16x1xf32> to vector<16x128xf32>
    %24 = arith.mulf %0, %23 : vector<16x128xf32>
    %25 = arith.truncf %24 : vector<16x128xf32> to vector<16x128xbf16>
    %26 = vector.extract_strided_slice %1 {offsets = [0, 6], sizes = [16, 1], strides = [1, 1]} : vector<16x12xf32> to vector<16x1xf32>
    %27 = vector.broadcast %26 : vector<16x1xf32> to vector<16x128xf32>
    %28 = arith.mulf %0, %27 : vector<16x128xf32>
    %29 = arith.truncf %28 : vector<16x128xf32> to vector<16x128xbf16>
    %30 = vector.extract_strided_slice %1 {offsets = [0, 7], sizes = [16, 1], strides = [1, 1]} : vector<16x12xf32> to vector<16x1xf32>
    %31 = vector.broadcast %30 : vector<16x1xf32> to vector<16x128xf32>
    %32 = arith.mulf %0, %31 : vector<16x128xf32>
    %33 = arith.truncf %32 : vector<16x128xf32> to vector<16x128xbf16>
    %34 = vector.extract_strided_slice %1 {offsets = [0, 8], sizes = [16, 1], strides = [1, 1]} : vector<16x12xf32> to vector<16x1xf32>
    %35 = vector.broadcast %34 : vector<16x1xf32> to vector<16x128xf32>
    %36 = arith.mulf %0, %35 : vector<16x128xf32>
    %37 = arith.truncf %36 : vector<16x128xf32> to vector<16x128xbf16>
    %38 = vector.extract_strided_slice %1 {offsets = [0, 9], sizes = [16, 1], strides = [1, 1]} : vector<16x12xf32> to vector<16x1xf32>
    %39 = vector.broadcast %38 : vector<16x1xf32> to vector<16x128xf32>
    %40 = arith.mulf %0, %39 : vector<16x128xf32>
    %41 = arith.truncf %40 : vector<16x128xf32> to vector<16x128xbf16>
    %42 = vector.extract_strided_slice %1 {offsets = [0, 10], sizes = [16, 1], strides = [1, 1]} : vector<16x12xf32> to vector<16x1xf32>
    %43 = vector.broadcast %42 : vector<16x1xf32> to vector<16x128xf32>
    %44 = arith.mulf %0, %43 : vector<16x128xf32>
    %45 = arith.truncf %44 : vector<16x128xf32> to vector<16x128xbf16>
    %46 = vector.extract_strided_slice %1 {offsets = [0, 11], sizes = [16, 1], strides = [1, 1]} : vector<16x12xf32> to vector<16x1xf32>
    %47 = vector.broadcast %46 : vector<16x1xf32> to vector<16x128xf32>
    %48 = arith.mulf %0, %47 : vector<16x128xf32>
    %49 = arith.truncf %48 : vector<16x128xf32> to vector<16x128xbf16>
    %50 = tpu.concatenate %5, %9, %13, %17, %21, %25, %29, %33, %37, %41, %45, %49 in 1 : vector<16x128xbf16>, vector<16x128xbf16>, vector<16x128xbf16>, vector<16x128xbf16>, vector<16x128xbf16>, vector<16x128xbf16>, vector<16x128xbf16>, vector<16x128xbf16>, vector<16x128xbf16>, vector<16x128xbf16>, vector<16x128xbf16>, vector<16x128xbf16> -> vector<16x1536xbf16>
    %c0_3 = arith.constant 0 : index
    %c0_4 = arith.constant 0 : index
    %51 = vector.load %arg3[%c0_3, %c0_4] : memref<1536x128xbf16, #tpu.memory_space<vmem>>, vector<1536x128xbf16>
    %cst = arith.constant dense<0.000000e+00> : vector<16x128xf32>
    %52 = tpu.matmul %50, %51, %cst {dimension_numbers = #tpu.dot_dimension_numbers<[1], [0], [0], [1], [0, 0, 1, 1], [], []>} : vector<16x1536xbf16>, vector<1536x128xbf16>, vector<16x128xf32> -> vector<16x128xf32>
    %53 = arith.truncf %52 : vector<16x128xf32> to vector<16x128xbf16>
    %c0_5 = arith.constant 0 : index
    %c0_6 = arith.constant 0 : index
    %54 = vector.load %arg4[%c0_5, %c0_6] : memref<128x3072xbf16, #tpu.memory_space<vmem>>, vector<128x3072xbf16>
    %cst_7 = arith.constant dense<0.000000e+00> : vector<16x3072xf32>
    %55 = tpu.matmul %53, %54, %cst_7 {dimension_numbers = #tpu.dot_dimension_numbers<[1], [0], [0], [1], [0, 0, 1, 1], [], []>} : vector<16x128xbf16>, vector<128x3072xbf16>, vector<16x3072xf32> -> vector<16x3072xf32>
    %c0_8 = arith.constant 0 : index
    %c0_9 = arith.constant 0 : index
    %56 = vector.load %arg5[%c0_8, %c0_9] : memref<1x3072xf32, #tpu.memory_space<vmem>>, vector<1x3072xf32>
    %57 = vector.broadcast %56 : vector<1x3072xf32> to vector<16x3072xf32>
    %58 = arith.addf %55, %57 : vector<16x3072xf32>
    %cst_10 = arith.constant 0.000000e+00 : f32
    %59 = vector.broadcast %cst_10 : f32 to vector<16x3072xf32>
    %60 = arith.maximumf %58, %59 : vector<16x3072xf32>
    %c0_11 = arith.constant 0 : index
    %c0_12 = arith.constant 0 : index
    %61 = vector.load %arg6[%c0_11, %c0_12] : memref<3x5xf32, #tpu.memory_space<vmem>>, vector<3x5xf32>
    %cst_13 = arith.constant 0.000000e+00 : f32
    %62 = vector.broadcast %cst_13 : f32 to vector<16x5xf32>
    %63 = vector.extract_strided_slice %60 {offsets = [0, 0], sizes = [16, 1024], strides = [1, 1]} : vector<16x3072xf32> to vector<16x1024xf32>
    %cst_14 = arith.constant dense<0.000000e+00> : vector<16xf32>
    %64 = vector.multi_reduction <add>, %63, %cst_14 [1] : vector<16x1024xf32> to vector<16xf32>
    %65 = vector.shape_cast %64 : vector<16xf32> to vector<16x1xf32>
    %cst_15 = arith.constant 9.765625E-4 : f32
    %66 = vector.broadcast %cst_15 : f32 to vector<16x1xf32>
    %67 = arith.mulf %65, %66 : vector<16x1xf32>
    %68 = vector.extract_strided_slice %61 {offsets = [0, 0], sizes = [1, 5], strides = [1, 1]} : vector<3x5xf32> to vector<1x5xf32>
    %69 = vector.broadcast %67 : vector<16x1xf32> to vector<16x5xf32>
    %70 = vector.broadcast %68 : vector<1x5xf32> to vector<16x5xf32>
    %71 = arith.mulf %69, %70 : vector<16x5xf32>
    %72 = arith.addf %62, %71 : vector<16x5xf32>
    %73 = vector.extract_strided_slice %60 {offsets = [0, 1024], sizes = [16, 1024], strides = [1, 1]} : vector<16x3072xf32> to vector<16x1024xf32>
    %cst_16 = arith.constant dense<0.000000e+00> : vector<16xf32>
    %74 = vector.multi_reduction <add>, %73, %cst_16 [1] : vector<16x1024xf32> to vector<16xf32>
    %75 = vector.shape_cast %74 : vector<16xf32> to vector<16x1xf32>
    %cst_17 = arith.constant 9.765625E-4 : f32
    %76 = vector.broadcast %cst_17 : f32 to vector<16x1xf32>
    %77 = arith.mulf %75, %76 : vector<16x1xf32>
    %78 = vector.extract_strided_slice %61 {offsets = [1, 0], sizes = [1, 5], strides = [1, 1]} : vector<3x5xf32> to vector<1x5xf32>
    %79 = vector.broadcast %77 : vector<16x1xf32> to vector<16x5xf32>
    %80 = vector.broadcast %78 : vector<1x5xf32> to vector<16x5xf32>
    %81 = arith.mulf %79, %80 : vector<16x5xf32>
    %82 = arith.addf %72, %81 : vector<16x5xf32>
    %83 = vector.extract_strided_slice %60 {offsets = [0, 2048], sizes = [16, 1024], strides = [1, 1]} : vector<16x3072xf32> to vector<16x1024xf32>
    %cst_18 = arith.constant dense<0.000000e+00> : vector<16xf32>
    %84 = vector.multi_reduction <add>, %83, %cst_18 [1] : vector<16x1024xf32> to vector<16xf32>
    %85 = vector.shape_cast %84 : vector<16xf32> to vector<16x1xf32>
    %cst_19 = arith.constant 9.765625E-4 : f32
    %86 = vector.broadcast %cst_19 : f32 to vector<16x1xf32>
    %87 = arith.mulf %85, %86 : vector<16x1xf32>
    %88 = vector.extract_strided_slice %61 {offsets = [2, 0], sizes = [1, 5], strides = [1, 1]} : vector<3x5xf32> to vector<1x5xf32>
    %89 = vector.broadcast %87 : vector<16x1xf32> to vector<16x5xf32>
    %90 = vector.broadcast %88 : vector<1x5xf32> to vector<16x5xf32>
    %91 = arith.mulf %89, %90 : vector<16x5xf32>
    %92 = arith.addf %82, %91 : vector<16x5xf32>
    %c0_20 = arith.constant 0 : index
    %c0_21 = arith.constant 0 : index
    %93 = vector.load %arg7[%c0_20, %c0_21] : memref<1x5xf32, #tpu.memory_space<vmem>>, vector<1x5xf32>
    %94 = vector.broadcast %93 : vector<1x5xf32> to vector<16x5xf32>
    %95 = arith.addf %92, %94 : vector<16x5xf32>
    %c0_22 = arith.constant 0 : index
    %c0_23 = arith.constant 0 : index
    %96 = vector.load %arg8[%c0_22, %c0_23] : memref<16x5xf32, #tpu.memory_space<vmem>>, vector<16x5xf32>
    tpu.vector_store %arg8[%c0_22, %c0_23], %95 {strides = array<i32>} : memref<16x5xf32, #tpu.memory_space<vmem>>, vector<16x5xf32>,
    return
  }
  func.func @transform_0(%arg0: i32) -> (i32, i32) {
    %c0_i32 = arith.constant 0 : i32
    %c0_i32_0 = arith.constant 0 : i32
    %c0_i32_1 = arith.constant 0 : i32
    return %c0_i32, %c0_i32_0 : i32, i32
  }
  func.func @transform_1(%arg0: i32) -> (i32, i32) {
    %c0_i32 = arith.constant 0 : i32
    %c0_i32_0 = arith.constant 0 : i32
    %c0_i32_1 = arith.constant 0 : i32
    return %c0_i32, %c0_i32_0 : i32, i32
  }
  func.func @transform_2(%arg0: i32) -> (i32, i32) {
    %c0_i32 = arith.constant 0 : i32
    %c0_i32_0 = arith.constant 0 : i32
    %c0_i32_1 = arith.constant 0 : i32
    return %c0_i32, %c0_i32_0 : i32, i32
  }
  func.func @transform_3(%arg0: i32) -> (i32, i32) {
    %c0_i32 = arith.constant 0 : i32
    %c0_i32_0 = arith.constant 0 : i32
    %c0_i32_1 = arith.constant 0 : i32
    return %c0_i32, %c0_i32_0 : i32, i32
  }
  func.func @transform_4(%arg0: i32) -> (i32, i32) {
    %c0_i32 = arith.constant 0 : i32
    %c0_i32_0 = arith.constant 0 : i32
    %c0_i32_1 = arith.constant 0 : i32
    return %c0_i32, %c0_i32_0 : i32, i32
  }
  func.func @transform_5(%arg0: i32) -> (i32, i32) {
    %c0_i32 = arith.constant 0 : i32
    %c0_i32_0 = arith.constant 0 : i32
    %c0_i32_1 = arith.constant 0 : i32
    return %c0_i32, %c0_i32_0 : i32, i32
  }
  func.func @transform_6(%arg0: i32) -> (i32, i32) {
    %c0_i32 = arith.constant 0 : i32
    %c0_i32_0 = arith.constant 0 : i32
    %c0_i32_1 = arith.constant 0 : i32
    return %c0_i32, %c0_i32_0 : i32, i32
  }
  func.func @transform_7(%arg0: i32) -> (i32, i32) {
    %c0_i32 = arith.constant 0 : i32
    %c0_i32_0 = arith.constant 0 : i32
    %c0_i32_1 = arith.constant 0 : i32
    return %c0_i32, %c0_i32_0 : i32, i32
  }
}

</mosaic_0001>

<bundles_post_ra>
// kernel: venezia_forward.1
= control target key start
LH: loop header
LB: loop body
LE: loop exit
PB: predicated region body
PF: predicated region fallthrough
CT: control target
= control target key end

     0   :  { %12 = vsyncpa [#allocation3], 0  ;;  %s4019_s0 = inlined_call_operand.vmem [shape: f32[16,128], index: 0, kind: input, shape index: {}]   ;;  %s4020_s1 = inlined_call_operand.vmem [shape: f32[16,12], index: 1, kind: input, shape index: {}]   ;;  %s4021_s2 = inlined_call_operand.hbm [shape: bf16[1536,128], index: 2, kind: input, shape index: {}]   ;;  %s4022_s3 = inlined_call_operand.hbm [shape: bf16[128,3072], index: 3, kind: input, shape index: {}]   ;;  %s4023_s4 = inlined_call_operand.vmem [shape: f32[1,3072], index: 4, kind: input, shape index: {}]   ;;  %s4024_s5 = inlined_call_operand.vmem [shape: f32[3,5], index: 5, kind: input, shape index: {}]   ;;  %s4025_s6 = inlined_call_operand.vmem [shape: f32[1,5], index: 6, kind: input, shape index: {}]   ;;  %s4026_s7 = inlined_call_operand.vmem [shape: f32[16,5], index: 7, kind: output, shape index: {}]  }
   0x1   :  { %13 = vsyncpa [#allocation5], 0  ;;  %s3756_s24 = smov [#allocation2]   ;;  %s3708_s28 = scalar_lea.hbm %s4021_s2, 12288 }
   0x2   :  { %s23_s25 = sshll.u32 %s3756_s24, 4  ;;  %p3709_p0 = scmp.ne.s32.totalorder %s4021_s2, %s3708_s28  ;;  %s24_s25 = int_to_ptr.vmem [resolvable:$true] %s23_s25 }
   0x3   :  { %p3712_p1 = scmp.lt.u32.totalorder %s3708_s28, %s4021_s2 }
   0x5   :  { %p3714_p2 = pnand %p3712_p1, %p3709_p0 }
   0x7   :  { %3717 = shalt.err (!%p3714_p2)
}
   0x8   :  { %s3718_s10 = scalar_lea.vmem %s24_s25, 12288  ;;  %p3723_p4 = scmp.lt.s32.totalorder %s24_s25, %s24_s25 }
   0x9   :  { %p3719_p3 = scmp.ne.s32.totalorder %s24_s25, %s3718_s10  ;;  %p3724_p5 = scmp.lt.s32.totalorder %s3718_s10, %s3718_s10 }
   0xb   :  { %p3725_p6 = por %p3724_p5, %p3723_p4 }
   0xd   :  { %p3726_p7 = pnand %p3725_p6, %p3719_p3 }
   0xf   :  { %3729 = shalt.err (!%p3726_p7)
}
  0x10   :  { %s3757_s11 = smov 64   ;;  %s3758_s12 = smov 4  }
  0x11   :  { %29 = dma.hbm_to_vmem [thread:$0]  %s4021_s2, 12288, %s24_s25, [#allocation3], %s3757_s11, %s3757_s11, %s3758_s12  }
  0x12   :  { %s3759_s15 = smov [#allocation4]   ;;  %s3730_s19 = scalar_lea.hbm %s4022_s3, 24576 }
  0x13   :  { %s35_s16 = sshll.u32 %s3759_s15, 4  ;;  %p3731_p8 = scmp.ne.s32.totalorder %s4022_s3, %s3730_s19  ;;  %s36_s16 = int_to_ptr.vmem [resolvable:$true] %s35_s16 }
  0x14   :  { %p3734_p9 = scmp.lt.u32.totalorder %s3730_s19, %s4022_s3 }
  0x16   :  { %p3736_p10 = pnand %p3734_p9, %p3731_p8 }
  0x18   :  { %3739 = shalt.err (!%p3736_p10)
}
  0x19   :  { %s3740_s24 = scalar_lea.vmem %s36_s16, 24576  ;;  %p3745_p12 = scmp.lt.s32.totalorder %s36_s16, %s36_s16 }
  0x1a   :  { %p3741_p11 = scmp.ne.s32.totalorder %s36_s16, %s3740_s24  ;;  %p3746_p13 = scmp.lt.s32.totalorder %s3740_s24, %s3740_s24 }
  0x1c   :  { %p3747_p0 = por %p3746_p13, %p3745_p12 }
  0x1e   :  { %p3748_p1 = pnand %p3747_p0, %p3741_p11 }
  0x20   :  { %3751 = shalt.err (!%p3748_p1)
}
  0x21   :  { %s3760_s2 = smov 1536   ;;  %s3761_s25 = smov 96  }
  0x22   :  { %41 = dma.hbm_to_vmem [thread:$0]  %s4022_s3, 24576, %s36_s16, [#allocation5], %s3760_s2, %s3760_s2, %s3761_s25  }
  0x23   :  { %3752 = dma.done.wait [#allocation3], 12288  }
  0x24   :  { %3753 = vsyncadd [#allocation3], 4294955008 }
  0x25   :  { %3754 = dma.done.wait [#allocation5], 24576  }
  0x26   :  { %3755 = vsyncadd [#allocation5], 4294942720  ;;  %v3762_v0 = vmov 1   ;;  %v3763_v1 = vmov 0   ;;  %v3842_v2 = vld [vmem:[%s4020_s1] sm:$0xff]  ;;  %v3847_v3 = vld [vmem:[%s4020_s1 + $0x8] sm:$0xff] }
  0x27   :  { %3592 = vset.pattern.permute.xlu0 %v3762_v0  ;;  %3593 = vset.pattern.permute.xlu1 %v3763_v1  ;;  %v3612_v4 = vld [vmem:[#allocation2 + $0x40] sm:$0xff]   ;;  %v3614_v6 = vld [vmem:[#allocation2 + $0x48] sm:$0xff]   ;;  %v3616_v8 = vld [vmem:[#allocation2 + $0x50] sm:$0xff]   ;;  %v3764_v12 = vmov 3   ;;  %v3765_v18 = vmov 2   ;;  %v3766_v23 = vmov 5  }
  0x28   :  { %61 = vperm.xlu1 %3593, %v3842_v2   ;;  %73 = vperm.xlu0 %3592, %v3842_v2   ;;  %v3613_v5 = vld [vmem:[#allocation2] sm:$0xff]   ;;  %v3615_v7 = vld [vmem:[#allocation2 + $0x8] sm:$0xff]   ;;  %v3617_v9 = vld [vmem:[#allocation2 + $0x10] sm:$0xff]   ;;  %v3767_v24 = vmov 4   ;;  %v3768_v30 = vmov 7   ;;  %v3769_v35 = vmov 9  }
  0x29   :  { %3442 = vmatprep.subr.bf16.mxu0 %v3612_v4  ;;  %v3618_v10 = vld [vmem:[#allocation2 + $0xc0] sm:$0xff]   ;;  %v3620_v13 = vld [vmem:[#allocation2 + $0x58] sm:$0xff]   ;;  %v3622_v15 = vld [vmem:[#allocation2 + $0xc8] sm:$0xff]   ;;  %v3770_v40 = vmov 8   ;;  %v3771_v43 = vmov 6   ;;  %v3772_v44 = vmov 10  }
  0x2a   :  { %3443 = vmatpush3.bf16.msra.mxu0 %v3613_v5  ;;  %v3619_v11 = vld [vmem:[#allocation2 + $0x80] sm:$0xff]   ;;  %v3621_v14 = vld [vmem:[#allocation2 + $0x18] sm:$0xff]   ;;  %3464 = vmatprep.subr.bf16.mxu1 %v3618_v10  ;;  %v3623_v16 = vld [vmem:[#allocation2 + $0x88] sm:$0xff]   ;;  %v3773_v47 = vmov 11   ;;  %vm3144_vm0 = vcmask 39936  }
  0x2b   :  { %3444 = vmatprep.subr.bf16.mxu0 %v3614_v6  ;;  %3465 = vmatpush3.bf16.msra.mxu1 %v3619_v11  ;;  %v3624_v17 = vld [vmem:[#allocation2 + $0x60] sm:$0xff]   ;;  %v3626_v19 = vld [vmem:[#allocation2 + $0xd0] sm:$0xff]   ;;  %v3628_v22 = vld [vmem:[#allocation2 + $0x68] sm:$0xff]  }
  0x2c   :  { %66 = vperm.xlu1 %3593, %v3847_v3   ;;  %77 = vperm.xlu0 %3592, %v3847_v3   ;;  %v3625_v20 = vld [vmem:[#allocation2 + $0x20] sm:$0xff]   ;;  %v3627_v21 = vld [vmem:[#allocation2 + $0x90] sm:$0xff]   ;;  %v3630_v25 = vld [vmem:[#allocation2 + $0xd8] sm:$0xff]  }
  0x2d   :  { %3466 = vmatprep.subr.bf16.mxu1 %v3622_v15  ;;  %v3629_v26 = vld [vmem:[#allocation2 + $0x28] sm:$0xff]   ;;  %v3631_v27 = vld [vmem:[#allocation2 + $0x98] sm:$0xff]   ;;  %v3632_v28 = vld [vmem:[#allocation2 + $0x70] sm:$0xff]  }
  0x2e   :  { %3445 = vmatpush3.bf16.msra.mxu0 %v3615_v7  ;;  %v3634_v29 = vld [vmem:[#allocation2 + $0xe0] sm:$0xff]   ;;  %v3633_v31 = vld [vmem:[#allocation2 + $0x30] sm:$0xff]   ;;  %v3636_v33 = vld [vmem:[#allocation2 + $0x78] sm:$0xff]  }
  0x2f   :  { %3446 = vmatprep.subr.bf16.mxu0 %v3616_v8  ;;  %3467 = vmatpush3.bf16.msra.mxu1 %v3623_v16  ;;  %v3635_v32 = vld [vmem:[#allocation2 + $0xa0] sm:$0xff]   ;;  %v3638_v34 = vld [vmem:[#allocation2 + $0xe8] sm:$0xff]   ;;  %v3637_v36 = vld [vmem:[#allocation2 + $0x38] sm:$0xff]  }
  0x30   :  { %3595 = vset.pattern.permute.xlu1 %v3764_v12  ;;  %3594 = vset.pattern.permute.xlu0 %v3764_v12  ;;  %v3639_v37 = vld [vmem:[#allocation2 + $0xa8] sm:$0xff]   ;;  %v3640_v38 = vld [vmem:[#allocation2 + $0x140] sm:$0xff]   ;;  %v3641_v39 = vld [vmem:[#allocation2 + $0xf0] sm:$0xff]  }
  0x31   :  { %99 = vperm.xlu1 %3595, %v3847_v3   ;;  %95 = vperm.xlu0 %3594, %v3842_v2   ;;  %v3643_v41 = vld [vmem:[#allocation2 + $0xb0] sm:$0xff]   ;;  %v3645_v42 = vld [vmem:[#allocation2 + $0xf8] sm:$0xff]   ;;  %v3650_v46 = vld [vmem:[#allocation2 + $0x1c0] sm:$0xff]  }
  0x32   :  { %3447 = vmatpush3.bf16.msra.mxu0 %v3617_v9  ;;  %3468 = vmatprep.subr.bf16.mxu1 %v3626_v19  ;;  %v3647_v45 = vld [vmem:[#allocation2 + $0xb8] sm:$0xff]   ;;  %v3876_v50 = vld [vmem:[%s4019_s0] sm:$0xff]  ;;  %v3881_v51 = vld [vmem:[%s4019_s0 + $0x8] sm:$0xff] }
  0x33   :  { %3448 = vmatprep.subr.bf16.mxu0 %v3620_v13  ;;  %3469 = vmatpush3.bf16.msra.mxu1 %v3627_v21  ;;  %v3642_v60 = vld [vmem:[#allocation2 + $0x100] sm:$0xff]   ;;  %v3644_v61 = vld [vmem:[#allocation2 + $0x148] sm:$0xff]   ;;  %v3648_v5 = vld [vmem:[#allocation2 + $0x150] sm:$0xff]  }
  0x34   :  { %3470 = vmatprep.subr.bf16.mxu1 %v3630_v25  ;;  %v3649_v10 = vld [vmem:[#allocation2 + $0x110] sm:$0xff]   ;;  %v3651_v11 = vld [vmem:[#allocation2 + $0x180] sm:$0xff]   ;;  %v3652_v12 = vld [vmem:[#allocation2 + $0x158] sm:$0xff]  }
  0x35   :  { %3596 = vset.pattern.permute.xlu1 %v3765_v18  ;;  %3597 = vset.pattern.permute.xlu0 %v3765_v18  ;;  %v3653_v16 = vld [vmem:[#allocation2 + $0x118] sm:$0xff]   ;;  %v3656_v18 = vld [vmem:[#allocation2 + $0x160] sm:$0xff]   ;;  %v3658_v19 = vld [vmem:[#allocation2 + $0x1d0] sm:$0xff]  }
  0x36   :  { %84 = vperm.xlu1 %3596, %v3842_v2   ;;  %88 = vperm.xlu0 %3597, %v3847_v3   ;;  %v3659_v25 = vld [vmem:[#allocation2 + $0x190] sm:$0xff]  }
  0x37   :  { %3449 = vmatpush3.bf16.msra.mxu0 %v3621_v14  ;;  %3471 = vmatpush3.bf16.msra.mxu1 %v3631_v27  ;;  %v3654_v14 = vld [vmem:[#allocation2 + $0x1c8] sm:$0xff]   ;;  %v3662_v27 = vld [vmem:[#allocation2 + $0x1d8] sm:$0xff]  }
  0x38   :  { %3450 = vmatprep.subr.bf16.mxu0 %v3624_v17  ;;  %3472 = vmatprep.subr.bf16.mxu1 %v3634_v29  ;;  %v3655_v17 = vld [vmem:[#allocation2 + $0x188] sm:$0xff]  }
  0x39   :  { %v3661_v29 = vld [vmem:[#allocation2 + $0x128] sm:$0xff]  }
  0x3a   :  { %3598 = vset.pattern.permute.xlu1 %v3766_v23  ;;  %3599 = vset.pattern.permute.xlu0 %v3767_v24 }
  0x3b   :  { %117 = vperm.xlu1 %3598, %v3842_v2   ;;  %106 = vperm.xlu0 %3599, %v3842_v2  }
  0x3c   :  { %3451 = vmatpush3.bf16.msra.mxu0 %v3625_v20  ;;  %3473 = vmatpush3.bf16.msra.mxu1 %v3635_v32  ;;  %v3664_v32 = vld [vmem:[#allocation2 + $0x170] sm:$0xff]  }
  0x3d   :  { %3452 = vmatprep.subr.bf16.mxu0 %v3628_v22  ;;  %3474 = vmatprep.subr.bf16.mxu1 %v3638_v34  ;;  %v3657_v22 = vld [vmem:[#allocation2 + $0x120] sm:$0xff]  }
  0x3f   :  { %121 = vperm.xlu1 %3598, %v3847_v3   ;;  %3602 = vset.pattern.permute.xlu0 %v3768_v30 }
  0x40   :  { %143 = vperm.xlu0 %3602, %v3847_v3   ;;  %3453 = vmatpush3.bf16.msra.mxu0 %v3629_v26  ;;  %v3660_v26 = vld [vmem:[#allocation2 + $0x168] sm:$0xff]  }
  0x41   :  { %3454 = vmatprep.subr.bf16.mxu0 %v3632_v28  ;;  %3475 = vmatpush3.bf16.msra.mxu1 %v3639_v37 }
  0x42   :  { %3476 = vmatprep.subr.bf16.mxu1 %v3641_v39 }
  0x43   :  { %3600 = vset.pattern.permute.xlu1 %v3767_v24 }
  0x44   :  { %110 = vperm.xlu1 %3600, %v3847_v3   ;;  %3604 = vset.pattern.permute.xlu0 %v3769_v35 }
  0x45   :  { %161 = vperm.xlu0 %3604, %v3842_v2   ;;  %3455 = vmatpush3.bf16.msra.mxu0 %v3633_v31  ;;  %v3663_v31 = vld [vmem:[#allocation2 + $0x198] sm:$0xff]  }
  0x46   :  { %3456 = vmatprep.subr.bf16.mxu0 %v3636_v33  ;;  %3477 = vmatpush3.bf16.msra.mxu1 %v3643_v41  ;;  %v3666_v33 = vld [vmem:[#allocation2 + $0x1e0] sm:$0xff]  }
  0x47   :  { %3478 = vmatprep.subr.bf16.mxu1 %v3645_v42  ;;  %v3669_v42 = vld [vmem:[#allocation2 + $0x138] sm:$0xff]  }
  0x48   :  { %3601 = vset.pattern.permute.xlu1 %v3768_v30 }
  0x49   :  { %139 = vperm.xlu1 %3601, %v3842_v2   ;;  %3607 = vset.pattern.permute.xlu0 %v3770_v40 }
  0x4a   :  { %154 = vperm.xlu0 %3607, %v3847_v3   ;;  %3457 = vmatpush3.bf16.msra.mxu0 %v3637_v36  ;;  %v3667_v36 = vld [vmem:[#allocation2 + $0x1a0] sm:$0xff]  }
  0x4b   :  { %3486 = vmatprep.subr.bf16.mxu0 %v3640_v38  ;;  %3479 = vmatpush3.bf16.msra.mxu1 %v3647_v45  ;;  %v3668_v38 = vld [vmem:[#allocation2 + $0x178] sm:$0xff]  }
  0x4c   :  { %3508 = vmatprep.subr.bf16.mxu1 %v3650_v46  ;;  %v3671_v46 = vld [vmem:[#allocation2 + $0x1a8] sm:$0xff]  }
  0x4d   :  { %3603 = vset.pattern.permute.xlu1 %v3771_v43 }
  0x4e   :  { %128 = vperm.xlu1 %3603, %v3842_v2   ;;  %3609 = vset.pattern.permute.xlu0 %v3772_v44 }
  0x4f   :  { %172 = vperm.xlu0 %3609, %v3842_v2  }
  0x52   :  { %132 = vperm.xlu1 %3603, %v3847_v3  }
  0x53   :  { %3611 = vset.pattern.permute.xlu0 %v3773_v47 }
  0x56   :  { %3605 = vset.pattern.permute.xlu1 %v3769_v35  ;;  %v3665_v35 = vld [vmem:[#allocation2 + $0x130] sm:$0xff]  }
  0x57   :  { %165 = vperm.xlu1 %3605, %v3847_v3  }
  0x5b   :  { %3606 = vset.pattern.permute.xlu1 %v3770_v40  ;;  %v3670_v40 = vld [vmem:[#allocation2 + $0x1e8] sm:$0xff]  }
  0x5c   :  { %150 = vperm.xlu1 %3606, %v3842_v2  }
  0x60   :  { %3608 = vset.pattern.permute.xlu1 %v3773_v47  ;;  %v3672_v47 = vld [vmem:[#allocation2 + $0x240] sm:$0xff]  }
  0x61   :  { %183 = vperm.xlu1 %3608, %v3842_v2  }
  0x65   :  { %187 = vperm.xlu1 %3608, %v3847_v3  }
  0x69   :  { %3610 = vset.pattern.permute.xlu1 %v3772_v44 }
  0x6a   :  { %176 = vperm.xlu1 %3610, %v3847_v3   ;;  %v3646_v3 = vld [vmem:[#allocation2 + $0x108] sm:$0xff]  }
  0xa7   :  { %v62_v48 = vpop.permute.xlu1 %61  ;;  %v74_v49 = vpop.permute.xlu0 %73 }
  0xa8   :  { %v69_v54 = vmul.f32 %v62_v48, %v3876_v50  ;;  %v80_v55 = vmul.f32 %v74_v49, %v3876_v50  ;;  %v3673_v48 = vld [vmem:[#allocation2 + $0x1f0] sm:$0xff]  }
  0xab   :  { %v67_v52 = vpop.permute.xlu1 %66  ;;  %v78_v53 = vpop.permute.xlu0 %77 }
  0xac   :  { %v70_v56 = vmul.f32 %v67_v52, %v3881_v51  ;;  %v81_v57 = vmul.f32 %v78_v53, %v3881_v51  ;;  %v3674_v52 = vld [vmem:[#allocation2 + $0x200] sm:$0xff]  }
  0xae   :  { %v71_v58 = vpack.c.bf16 %v70_v56, %v69_v54  ;;  %v82_v59 = vpack.c.bf16 %v81_v57, %v80_v55  ;;  %v3675_v54 = vld [vmem:[#allocation2 + $0x1b0] sm:$0xff]   ;;  %v3676_v55 = vld [vmem:[#allocation2 + $0x248] sm:$0xff]   ;;  %v3677_v56 = vld [vmem:[#allocation2 + $0x1f8] sm:$0xff]  }
  0xb0   :  { %v100_v62 = vpop.permute.xlu1 %99  ;;  %v96_v63 = vpop.permute.xlu0 %95  ;;  %993 = vmatprep.mubr.bf16.mxu0 %v82_v59  ;;  %v3678_v59 = vld [vmem:[#allocation2 + $0x208] sm:$0xff]  }
  0xb1   :  { %v103_v0 = vmul.f32 %v100_v62, %v3881_v51  ;;  %v102_v2 = vmul.f32 %v96_v63, %v3876_v50  ;;  %994 = vmatmul.mubr.bf16.vlgmr.msra.gmra.mrb[0].mxu0 %v71_v58 }
  0xb2   :  { %3487 = vmatpush3.bf16.msra.mxu0 %v3642_v60  ;;  %v3679_v60 = vld [vmem:[#allocation2 + $0x1b8] sm:$0xff]  }
  0xb3   :  { %3488 = vmatprep.subr.bf16.mxu0 %v3644_v61  ;;  %v104_v4 = vpack.c.bf16 %v103_v0, %v102_v2  ;;  %v3680_v61 = vld [vmem:[#allocation2 + $0x250] sm:$0xff]   ;;  %v3682_v0 = vld [vmem:[#allocation2 + $0x2c0] sm:$0xff]  }
  0xb5   :  { %v85_v6 = vpop.permute.xlu1 %84  ;;  %v89_v7 = vpop.permute.xlu0 %88  ;;  %1034 = vmatprep.mubr.bf16.mxu1 %v104_v4 }
  0xb6   :  { %v91_v8 = vmul.f32 %v85_v6, %v3876_v50  ;;  %v92_v9 = vmul.f32 %v89_v7, %v3881_v51  ;;  %3489 = vmatpush3.bf16.msra.mxu0 %v3646_v3  ;;  %v3681_v3 = vld [vmem:[#allocation2 + $0x210] sm:$0xff]   ;;  %v3684_v6 = vld [vmem:[#allocation2 + $0x258] sm:$0xff]  }
  0xb7   :  { %3490 = vmatprep.subr.bf16.mxu0 %v3648_v5  ;;  %v3683_v5 = vld [vmem:[#allocation2 + $0x280] sm:$0xff]  }
  0xb8   :  { %v93_v13 = vpack.c.bf16 %v92_v9, %v91_v8 }
  0xba   :  { %3491 = vmatpush3.bf16.msra.mxu0 %v3649_v10  ;;  %v118_v15 = vpop.permute.xlu1 %117  ;;  %1035 = vmatmul.mubr.bf16.vlgmr.msra.gmra.mrb[0].mxu1 %v93_v13  ;;  %v107_v23 = vpop.permute.xlu0 %106  ;;  %v3686_v10 = vld [vmem:[#allocation2 + $0x2c8] sm:$0xff]  }
  0xbb   :  { %3509 = vmatpush3.bf16.msra.mxu1 %v3651_v11  ;;  %3492 = vmatprep.subr.bf16.mxu0 %v3652_v12  ;;  %v124_v20 = vmul.f32 %v118_v15, %v3876_v50  ;;  %v113_v44 = vmul.f32 %v107_v23, %v3876_v50  ;;  %v3685_v12 = vld [vmem:[#allocation2 + $0x218] sm:$0xff]   ;;  %v3688_v15 = vld [vmem:[#allocation2 + $0x260] sm:$0xff]  }
  0xbc   :  { %3510 = vmatprep.subr.bf16.mxu1 %v3654_v14  ;;  %v3687_v14 = vld [vmem:[#allocation2 + $0x288] sm:$0xff]   ;;  %v3694_v23 = vld [vmem:[#allocation2 + $0x2d8] sm:$0xff]  }
  0xbe   :  { %3493 = vmatpush3.bf16.msra.mxu0 %v3653_v16  ;;  %v122_v21 = vpop.permute.xlu1 %121 }
  0xbf   :  { %v125_v24 = vmul.f32 %v122_v21, %v3881_v51  ;;  %3511 = vmatpush3.bf16.msra.mxu1 %v3655_v17  ;;  %3494 = vmatprep.subr.bf16.mxu0 %v3656_v18  ;;  %v144_v34 = vpop.permute.xlu0 %143  ;;  %v3690_v17 = vld [vmem:[#allocation2 + $0x2d0] sm:$0xff]  }
  0xc0   :  { %3512 = vmatprep.subr.bf16.mxu1 %v3658_v19  ;;  %v147_v37 = vmul.f32 %v144_v34, %v3881_v51  ;;  %v3689_v19 = vld [vmem:[#allocation2 + $0x220] sm:$0xff]   ;;  %v3691_v21 = vld [vmem:[#allocation2 + $0x290] sm:$0xff]  }
  0xc1   :  { %v126_v28 = vpack.c.bf16 %v125_v24, %v124_v20  ;;  %v3699_v34 = vld [vmem:[#allocation2 + $0x2a0] sm:$0xff]  }
  0xc2   :  { %3495 = vmatpush3.bf16.msra.mxu0 %v3657_v22  ;;  %v3692_v22 = vld [vmem:[#allocation2 + $0x268] sm:$0xff]  }
  0xc3   :  { %3513 = vmatpush3.bf16.msra.mxu1 %v3659_v25  ;;  %1075 = vmatprep.mubr.bf16.mxu0 %v126_v28  ;;  %v111_v30 = vpop.permute.xlu1 %110  ;;  %v3693_v25 = vld [vmem:[#allocation2 + $0x228] sm:$0xff]   ;;  %v3696_v28 = vld [vmem:[#allocation2 + $0x270] sm:$0xff]  }
  0xc4   :  { %3496 = vmatprep.subr.bf16.mxu0 %v3660_v26  ;;  %3514 = vmatprep.subr.bf16.mxu1 %v3662_v27  ;;  %v114_v43 = vmul.f32 %v111_v30, %v3881_v51  ;;  %v162_v58 = vpop.permute.xlu0 %161  ;;  %v3695_v26 = vld [vmem:[#allocation2 + $0x298] sm:$0xff]  }
  0xc5   :  { %v168_v2 = vmul.f32 %v162_v58, %v3876_v50 }
  0xc6   :  { %3497 = vmatpush3.bf16.msra.mxu0 %v3661_v29  ;;  %v115_v53 = vpack.c.bf16 %v114_v43, %v113_v44  ;;  %v3698_v29 = vld [vmem:[#allocation2 + $0x2e0] sm:$0xff]   ;;  %v3704_v43 = vld [vmem:[#allocation2 + $0x2f0] sm:$0xff]  }
  0xc7   :  { %3515 = vmatpush3.bf16.msra.mxu1 %v3663_v31  ;;  %3498 = vmatprep.subr.bf16.mxu0 %v3664_v32 }
  0xc8   :  { %v140_v39 = vpop.permute.xlu1 %139  ;;  %3516 = vmatprep.subr.bf16.mxu1 %v3666_v33  ;;  %v3697_v33 = vld [vmem:[#allocation2 + $0x230] sm:$0xff]  }
  0xc9   :  { %v146_v41 = vmul.f32 %v140_v39, %v3876_v50  ;;  %v155_v8 = vpop.permute.xlu0 %154 }
  0xca   :  { %3499 = vmatpush3.bf16.msra.mxu0 %v3665_v35  ;;  %v158_v13 = vmul.f32 %v155_v8, %v3881_v51  ;;  %v1292_v8 = vld [vmem:[#allocation4 + $0x2a0] sm:$0xff] }
  0xcb   :  { %3517 = vmatpush3.bf16.msra.mxu1 %v3667_v36  ;;  %v148_v45 = vpack.c.bf16 %v147_v37, %v146_v41  ;;  %3500 = vmatprep.subr.bf16.mxu0 %v3668_v38  ;;  %v3700_v36 = vld [vmem:[#allocation2 + $0x278] sm:$0xff]   ;;  %v3702_v37 = vld [vmem:[#allocation2 + $0x2e8] sm:$0xff]  }
  0xcc   :  { %3518 = vmatprep.subr.bf16.mxu1 %v3670_v40  ;;  %v3701_v40 = vld [vmem:[#allocation2 + $0x238] sm:$0xff]  }
  0xcd   :  { %v129_v49 = vpop.permute.xlu1 %128  ;;  %1116 = vmatprep.mubr.bf16.mxu1 %v148_v45  ;;  %v3705_v45 = vld [vmem:[#allocation2 + $0x2b0] sm:$0xff]  }
  0xce   :  { %3501 = vmatpush3.bf16.msra.mxu0 %v3669_v42  ;;  %v135_v62 = vmul.f32 %v129_v49, %v3876_v50  ;;  %v173_v32 = vpop.permute.xlu0 %172  ;;  %v3703_v42 = vld [vmem:[#allocation2 + $0x2a8] sm:$0xff]  }
  0xcf   :  { %3519 = vmatpush3.bf16.msra.mxu1 %v3671_v46  ;;  %3530 = vmatprep.subr.bf16.mxu0 %v3672_v47  ;;  %v179_v38 = vmul.f32 %v173_v32, %v3876_v50  ;;  %v3706_v46 = vld [vmem:[#allocation2 + $0x2f8] sm:$0xff]   ;;  %v1220_v47 = vld [vmem:[#allocation4 + $0x60] sm:$0xff] }
  0xd0   :  { %3520 = vmatprep.subr.bf16.mxu1 %v3673_v48  ;;  %v1209_v48 = vld [vmem:[#allocation4 + $0x8] sm:$0xff] }
  0xd1   :  { %1076 = vmatmul.mubr.bf16.vlgmr.msra.gmra.mrb[4].mxu0 %v115_v53  ;;  %v133_v57 = vpop.permute.xlu1 %132  ;;  %v1221_v53 = vld [vmem:[#allocation4 + $0x68] sm:$0xff] }
  0xd2   :  { %3531 = vmatpush3.bf16.msra.mxu0 %v3674_v52  ;;  %v136_v63 = vmul.f32 %v133_v57, %v3881_v51  ;;  %v3252_v57 = vcombine.high %v1209_v48, %v1221_v53 }
  0xd3   :  { %3521 = vmatpush3.bf16.msra.mxu1 %v3675_v54  ;;  %3532 = vmatprep.subr.bf16.mxu0 %v3676_v55  ;;  %v1232_v54 = vld [vmem:[#allocation4 + $0xc0] sm:$0xff] }
  0xd4   :  { %3522 = vmatprep.subr.bf16.mxu1 %v3677_v56  ;;  %v137_v9 = vpack.c.bf16 %v136_v63, %v135_v62  ;;  %v1244_v55 = vld [vmem:[#allocation4 + $0x120] sm:$0xff]  ;;  %v3251_v56 = vcombine.low %v1209_v48, %v1221_v53  ;;  %v3911_v48 = vld [vmem:[#allocation4 + $0x70] sm:$0xff]  ;;  %v3917_v53 = vld [vmem:[#allocation4 + $0x78] sm:$0xff] }
  0xd5   :  { %v3274_v58 = vcombine.high %v1232_v54, %v1244_v55  ;;  %v1268_v63 = vld [vmem:[#allocation4 + $0x1e0] sm:$0xff] }
  0xd6   :  { %3533 = vmatpush3.bf16.msra.mxu0 %v3678_v59  ;;  %v166_v4 = vpop.permute.xlu1 %165  ;;  %v1233_v59 = vld [vmem:[#allocation4 + $0xc8] sm:$0xff] }
  0xd7   :  { %3523 = vmatpush3.bf16.msra.mxu1 %v3679_v60  ;;  %3534 = vmatprep.subr.bf16.mxu0 %v3680_v61  ;;  %v169_v7 = vmul.f32 %v166_v4, %v3881_v51  ;;  %v1245_v60 = vld [vmem:[#allocation4 + $0x128] sm:$0xff]  ;;  %v1256_v61 = vld [vmem:[#allocation4 + $0x180] sm:$0xff] }
  0xd8   :  { %3552 = vmatprep.subr.bf16.mxu1 %v3682_v0  ;;  %v3276_v62 = vcombine.high %v1233_v59, %v1245_v60  ;;  %v1257_v0 = vld [vmem:[#allocation4 + $0x188] sm:$0xff]  ;;  %v3275_v4 = vcombine.low %v1233_v59, %v1245_v60 }
  0xd9   :  { %v170_v11 = vpack.c.bf16 %v169_v7, %v168_v2  ;;  %v1269_v2 = vld [vmem:[#allocation4 + $0x1e8] sm:$0xff]  ;;  %v1280_v7 = vld [vmem:[#allocation4 + $0x240] sm:$0xff] }
  0xda   :  { %1117 = vmatmul.mubr.bf16.vlgmr.msra.gmra.mrb[4].mxu1 %v137_v9  ;;  %3535 = vmatpush3.bf16.msra.mxu0 %v3681_v3  ;;  %v3273_v3 = vcombine.low %v1232_v54, %v1244_v55  ;;  %v1281_v9 = vld [vmem:[#allocation4 + $0x248] sm:$0xff] }
  0xdb   :  { %3553 = vmatpush3.bf16.msra.mxu1 %v3683_v5  ;;  %3536 = vmatprep.subr.bf16.mxu0 %v3684_v6  ;;  %v151_v16 = vpop.permute.xlu1 %150  ;;  %v3298_v5 = vcombine.high %v1256_v61, %v1268_v63  ;;  %v3300_v6 = vcombine.high %v1257_v0, %v1269_v2 }
  0xdc   :  { %3554 = vmatprep.subr.bf16.mxu1 %v3686_v10  ;;  %v157_v18 = vmul.f32 %v151_v16, %v3876_v50  ;;  %1157 = vmatprep.mubr.bf16.mxu0 %v170_v11  ;;  %v1293_v10 = vld [vmem:[#allocation4 + $0x2a8] sm:$0xff]  ;;  %v3297_v11 = vcombine.low %v1256_v61, %v1268_v63 }
  0xdd   :  { %v3323_v16 = vcombine.low %v1281_v9, %v1293_v10 }
  0xde   :  { %3537 = vmatpush3.bf16.msra.mxu0 %v3685_v12  ;;  %v159_v20 = vpack.c.bf16 %v158_v13, %v157_v18  ;;  %v3299_v12 = vcombine.low %v1257_v0, %v1269_v2  ;;  %v3322_v13 = vcombine.high %v1280_v7, %v1292_v8  ;;  %v1316_v18 = vld [vmem:[#allocation4 + $0x360] sm:$0xff] }
  0xdf   :  { %3555 = vmatpush3.bf16.msra.mxu1 %v3687_v14  ;;  %3538 = vmatprep.subr.bf16.mxu0 %v3688_v15  ;;  %v3324_v14 = vcombine.high %v1281_v9, %v1293_v10  ;;  %v3321_v15 = vcombine.low %v1280_v7, %v1292_v8 }
  0xe0   :  { %3556 = vmatprep.subr.bf16.mxu1 %v3690_v17  ;;  %v184_v24 = vpop.permute.xlu1 %183  ;;  %v1304_v17 = vld [vmem:[#allocation4 + $0x300] sm:$0xff] }
  0xe1   :  { %v190_v27 = vmul.f32 %v184_v24, %v3876_v50  ;;  %v3707_v50 = vld [vmem:[#allocation2 + $0x2b8] sm:$0xff]  }
  0xe2   :  { %3539 = vmatpush3.bf16.msra.mxu0 %v3689_v19  ;;  %v1305_v19 = vld [vmem:[#allocation4 + $0x308] sm:$0xff] }
  0xe3   :  { %3557 = vmatpush3.bf16.msra.mxu1 %v3691_v21  ;;  %3540 = vmatprep.subr.bf16.mxu0 %v3692_v22  ;;  %v1317_v21 = vld [vmem:[#allocation4 + $0x368] sm:$0xff]  ;;  %v3345_v22 = vcombine.low %v1304_v17, %v1316_v18 }
  0xe4   :  { %3558 = vmatprep.subr.bf16.mxu1 %v3694_v23  ;;  %v188_v30 = vpop.permute.xlu1 %187  ;;  %v3347_v23 = vcombine.low %v1305_v19, %v1317_v21  ;;  %v3348_v24 = vcombine.high %v1305_v19, %v1317_v21 }
  0xe5   :  { %v191_v31 = vmul.f32 %v188_v30, %v3881_v51 }
  0xe6   :  { %3541 = vmatpush3.bf16.msra.mxu0 %v3693_v25  ;;  %v1328_v25 = vld [vmem:[#allocation4 + $0x3c0] sm:$0xff] }
  0xe7   :  { %3559 = vmatpush3.bf16.msra.mxu1 %v3695_v26  ;;  %3542 = vmatprep.subr.bf16.mxu0 %v3696_v28  ;;  %v192_v35 = vpack.c.bf16 %v191_v31, %v190_v27  ;;  %v1340_v26 = vld [vmem:[#allocation4 + $0x420] sm:$0xff]  ;;  %v1329_v27 = vld [vmem:[#allocation4 + $0x3c8] sm:$0xff] }
  0xe8   :  { %3560 = vmatprep.subr.bf16.mxu1 %v3698_v29  ;;  %v3370_v28 = vcombine.high %v1328_v25, %v1340_v26  ;;  %v1341_v29 = vld [vmem:[#allocation4 + $0x428] sm:$0xff]  ;;  %v3369_v30 = vcombine.low %v1328_v25, %v1340_v26 }
  0xe9   :  { %1198 = vmatprep.mubr.bf16.mxu1 %v192_v35  ;;  %v177_v39 = vpop.permute.xlu1 %176  ;;  %v3371_v31 = vcombine.low %v1329_v27, %v1341_v29  ;;  %v3372_v32 = vcombine.high %v1329_v27, %v1341_v29  ;;  %v1353_v35 = vld [vmem:[#allocation4 + $0x488] sm:$0xff] }
  0xea   :  { %3543 = vmatpush3.bf16.msra.mxu0 %v3697_v33  ;;  %v180_v41 = vmul.f32 %v177_v39, %v3881_v51  ;;  %v1208_v51 = vld [vmem:[#allocation4] sm:$0xff] }
  0xeb   :  { %3561 = vmatpush3.bf16.msra.mxu1 %v3699_v34  ;;  %3544 = vmatprep.subr.bf16.mxu0 %v3700_v36  ;;  %v3249_v49 = vcombine.low %v1208_v51, %v1220_v47  ;;  %v3250_v52 = vcombine.high %v1208_v51, %v1220_v47  ;;  %v1352_v33 = vld [vmem:[#allocation4 + $0x480] sm:$0xff]  ;;  %v3909_v47 = vld [vmem:[#allocation4 + $0x10] sm:$0xff] }
  0xec   :  { %3562 = vmatprep.subr.bf16.mxu1 %v3702_v37  ;;  %v181_v44 = vpack.c.bf16 %v180_v41, %v179_v38  ;;  %v1364_v34 = vld [vmem:[#allocation4 + $0x4e0] sm:$0xff]  ;;  %v1365_v37 = vld [vmem:[#allocation4 + $0x4e8] sm:$0xff]  ;;  %v3253_v54 = vcombine.low %v3909_v47, %v3911_v48 }
  0xed   :  { %v3394_v36 = vcombine.high %v1352_v33, %v1364_v34  ;;  %v3393_v38 = vcombine.low %v1352_v33, %v1364_v34  ;;  %v3395_v39 = vcombine.low %v1353_v35, %v1365_v37  ;;  %v1376_v41 = vld [vmem:[#allocation4 + $0x540] sm:$0xff] }
  0xee   :  { %3545 = vmatpush3.bf16.msra.mxu0 %v3701_v40  ;;  %v3396_v40 = vcombine.high %v1353_v35, %v1365_v37 }
  0xef   :  { %3563 = vmatpush3.bf16.msra.mxu1 %v3703_v42  ;;  %2486 = vmatprep.subr.bf16.mxu0 %v3250_v52  ;;  %v1388_v42 = vld [vmem:[#allocation4 + $0x5a0] sm:$0xff]  ;;  %v3254_v52 = vcombine.high %v3909_v47, %v3911_v48 }
  0xf0   :  { %3564 = vmatprep.subr.bf16.mxu1 %v3704_v43  ;;  %v1377_v43 = vld [vmem:[#allocation4 + $0x548] sm:$0xff] }
  0xf1   :  { %1158 = vmatmul.mubr.bf16.vlgmr.msra.gmra.mrb[8].mxu0 %v159_v20  ;;  %v3346_v20 = vcombine.high %v1304_v17, %v1316_v18 }
  0xf2   :  { %2518 = vmatprep.mubr.bf16.mxu0 %v3763_v1  ;;  %2487 = vmatpush1.bf16.msra.mxu0 %v3249_v49  ;;  %v3913_v49 = vld [vmem:[#allocation4 + $0x18] sm:$0xff] }
  0xf3   :  { %3565 = vmatpush3.bf16.msra.mxu1 %v3705_v45  ;;  %2488 = vmatprep.subr.bf16.mxu0 %v3274_v58  ;;  %v1389_v45 = vld [vmem:[#allocation4 + $0x5a8] sm:$0xff]  ;;  %v3255_v55 = vcombine.low %v3913_v49, %v3917_v53 }
  0xf4   :  { %3566 = vmatprep.subr.bf16.mxu1 %v3706_v46  ;;  %v3417_v46 = vcombine.low %v1376_v41, %v1388_v42  ;;  %v3420_v51 = vcombine.high %v1377_v43, %v1389_v45 }
  0xf6   :  { %2489 = vmatpush1.bf16.msra.mxu0 %v3273_v3 }
  0xf7   :  { %3567 = vmatpush3.bf16.msra.mxu1 %v3707_v50  ;;  %2490 = vmatprep.subr.bf16.mxu0 %v3298_v5  ;;  %v3419_v50 = vcombine.low %v1377_v43, %v1389_v45 }
  0xf8   :  { %2529 = vmatprep.subr.bf16.mxu1 %v3252_v57 }
  0xfa   :  { %1199 = vmatmul.mubr.bf16.vlgmr.msra.gmra.mrb[8].mxu1 %v181_v44  ;;  %2491 = vmatpush1.bf16.msra.mxu0 %v3297_v11  ;;  %v3418_v44 = vcombine.high %v1376_v41, %v1388_v42  ;;  %v1235_v41 = vld [vmem:[#allocation4 + $0xd8] sm:$0xff] }
  0xfb   :  { %2561 = vmatprep.mubr.bf16.mxu1 %v3763_v1  ;;  %2530 = vmatpush1.bf16.msra.mxu1 %v3251_v56  ;;  %v3256_v56 = vcombine.high %v3913_v49, %v3917_v53  ;;  %v1247_v42 = vld [vmem:[#allocation4 + $0x138] sm:$0xff] }
  0xfc   :  { %2531 = vmatprep.subr.bf16.mxu1 %v3276_v62  ;;  %2492 = vmatprep.subr.bf16.mxu0 %v3322_v13 }
  0xfe   :  { %2493 = vmatpush1.bf16.msra.mxu0 %v3321_v15 }
  0xff   :  { %2532 = vmatpush1.bf16.msra.mxu1 %v3275_v4  ;;  %2494 = vmatprep.subr.bf16.mxu0 %v3346_v20 }
 0x100   :  { %2533 = vmatprep.subr.bf16.mxu1 %v3300_v6 }
 0x102   :  { %2495 = vmatpush1.bf16.msra.mxu0 %v3345_v22 }
 0x103   :  { %2534 = vmatpush1.bf16.msra.mxu1 %v3299_v12  ;;  %2496 = vmatprep.subr.bf16.mxu0 %v3370_v28 }
 0x104   :  { %2535 = vmatprep.subr.bf16.mxu1 %v3324_v14 }
 0x106   :  { %2497 = vmatpush1.bf16.msra.mxu0 %v3369_v30 }
 0x107   :  { %2536 = vmatpush1.bf16.msra.mxu1 %v3323_v16  ;;  %2498 = vmatprep.subr.bf16.mxu0 %v3394_v36 }
 0x108   :  { %2537 = vmatprep.subr.bf16.mxu1 %v3348_v24 }
 0x10a   :  { %2499 = vmatpush1.bf16.msra.mxu0 %v3393_v38 }
 0x10b   :  { %2538 = vmatpush1.bf16.msra.mxu1 %v3347_v23  ;;  %2500 = vmatprep.subr.bf16.mxu0 %v3418_v44 }
 0x10c   :  { %2539 = vmatprep.subr.bf16.mxu1 %v3372_v32 }
 0x10e   :  { %2501 = vmatpush1.bf16.msra.mxu0 %v3417_v46  ;;  %v3280_v46 = vcombine.high %v1235_v41, %v1247_v42 }
 0x10f   :  { %2540 = vmatpush1.bf16.msra.mxu1 %v3371_v31  ;;  %2572 = vmatprep.subr.bf16.mxu0 %v3254_v52  ;;  %v1259_v52 = vld [vmem:[#allocation4 + $0x198] sm:$0xff] }
 0x110   :  { %2541 = vmatprep.subr.bf16.mxu1 %v3396_v40  ;;  %v1246_v40 = vld [vmem:[#allocation4 + $0x130] sm:$0xff] }
 0x113   :  { %2542 = vmatpush1.bf16.msra.mxu1 %v3395_v39  ;;  %v1234_v39 = vld [vmem:[#allocation4 + $0xd0] sm:$0xff] }
 0x114   :  { %2543 = vmatprep.subr.bf16.mxu1 %v3420_v51  ;;  %v3278_v45 = vcombine.high %v1234_v39, %v1246_v40  ;;  %v1270_v51 = vld [vmem:[#allocation4 + $0x1f0] sm:$0xff] }
 0x117   :  { %2544 = vmatpush1.bf16.msra.mxu1 %v3419_v50  ;;  %v1258_v50 = vld [vmem:[#allocation4 + $0x190] sm:$0xff] }
 0x118   :  { %2615 = vmatprep.subr.bf16.mxu1 %v3256_v56  ;;  %v1271_v56 = vld [vmem:[#allocation4 + $0x1f8] sm:$0xff]  ;;  %v3301_v47 = vcombine.low %v1258_v50, %v1270_v51 }
 0x119   :  { %v3303_v48 = vcombine.low %v1259_v52, %v1271_v56 }
 0x184   :  { %v3458_v57 = vpop.f32.mrb[0].mxu0 }
 0x185   :  { %v3459_v58 = vpop.f32.mrb[1].mxu0 }
 0x186   :  { %v3460_v59 = vadd.f32 %v3459_v58, %v3458_v57  ;;  %v3461_v60 = vpop.f32.mrb[2].mxu0  ;;  %v3277_v57 = vcombine.low %v1234_v39, %v1246_v40  ;;  %v3279_v58 = vcombine.low %v1235_v41, %v1247_v42  ;;  %v1236_v40 = vld [vmem:[#allocation4 + $0xe0] sm:$0xff]  ;;  %v1237_v42 = vld [vmem:[#allocation4 + $0xe8] sm:$0xff] }
 0x187   :  { %v3462_v61 = vpop.f32.mrb[3].mxu0  ;;  %v1248_v41 = vld [vmem:[#allocation4 + $0x140] sm:$0xff] }
 0x188   :  { %v3463_v62 = vadd.f32 %v3462_v61, %v3461_v60  ;;  %v3304_v60 = vcombine.high %v1259_v52, %v1271_v56  ;;  %v1282_v61 = vld [vmem:[#allocation4 + $0x250] sm:$0xff]  ;;  %v1260_v52 = vld [vmem:[#allocation4 + $0x1a0] sm:$0xff] }
 0x189   :  { %v1272_v56 = vld [vmem:[#allocation4 + $0x200] sm:$0xff] }
 0x18d   :  { %v3480_v63 = vpop.f32.mrb[0].mxu1 }
 0x18e   :  { %v3481_v0 = vpop.f32.mrb[1].mxu1 }
 0x18f   :  { %v3482_v2 = vadd.f32 %v3481_v0, %v3480_v63  ;;  %v3483_v3 = vpop.f32.mrb[2].mxu1  ;;  %v1283_v63 = vld [vmem:[#allocation4 + $0x258] sm:$0xff] }
 0x190   :  { %v3484_v4 = vpop.f32.mrb[3].mxu1  ;;  %v1295_v0 = vld [vmem:[#allocation4 + $0x2b8] sm:$0xff] }
 0x191   :  { %v1037_v5 = vadd.f32 %v3482_v2, %v3460_v59  ;;  %v3485_v6 = vadd.f32 %v3484_v4, %v3483_v3  ;;  %v3302_v59 = vcombine.high %v1258_v50, %v1270_v51  ;;  %v3328_v53 = vcombine.high %v1283_v63, %v1295_v0  ;;  %v1307_v2 = vld [vmem:[#allocation4 + $0x318] sm:$0xff] }
 0x192   :  { %v1319_v3 = vld [vmem:[#allocation4 + $0x378] sm:$0xff]  ;;  %v3282_v50 = vcombine.high %v1236_v40, %v1248_v41 }
 0x193   :  { %v1040_v7 = vadd.f32 %v3485_v6, %v3463_v62  ;;  %v1294_v62 = vld [vmem:[#allocation4 + $0x2b0] sm:$0xff] }
 0x194   :  { %v3326_v49 = vcombine.high %v1282_v61, %v1294_v62  ;;  %v3325_v4 = vcombine.low %v1282_v61, %v1294_v62  ;;  %v3306_v61 = vcombine.high %v1260_v52, %v1272_v56 }
 0x1a4   :  { %v3502_v8 = vpop.f32.mrb[4].mxu0 }
 0x1a5   :  { %v3503_v9 = vpop.f32.mrb[5].mxu0 }
 0x1a6   :  { %v3504_v10 = vadd.f32 %v3503_v9, %v3502_v8  ;;  %v3505_v11 = vpop.f32.mrb[6].mxu0  ;;  %v1330_v8 = vld [vmem:[#allocation4 + $0x3d0] sm:$0xff] }
 0x1a7   :  { %v3506_v12 = vpop.f32.mrb[7].mxu0  ;;  %v1342_v9 = vld [vmem:[#allocation4 + $0x430] sm:$0xff] }
 0x1a8   :  { %v1078_v13 = vadd.f32 %v3504_v10, %v1037_v5  ;;  %v3507_v14 = vadd.f32 %v3506_v12, %v3505_v11  ;;  %v3327_v5 = vcombine.low %v1283_v63, %v1295_v0  ;;  %v1331_v10 = vld [vmem:[#allocation4 + $0x3d8] sm:$0xff]  ;;  %v1284_v63 = vld [vmem:[#allocation4 + $0x260] sm:$0xff] }
 0x1a9   :  { %v1343_v11 = vld [vmem:[#allocation4 + $0x438] sm:$0xff]  ;;  %v1296_v0 = vld [vmem:[#allocation4 + $0x2c0] sm:$0xff] }
 0x1aa   :  { %v1081_v15 = vadd.f32 %v3507_v14, %v1040_v7  ;;  %v3352_v7 = vcombine.high %v1307_v2, %v1319_v3  ;;  %v3374_v14 = vcombine.high %v1330_v8, %v1342_v9 }
 0x1ad   :  { %v3524_v16 = vpop.f32.mrb[4].mxu1 }
 0x1ae   :  { %v3525_v17 = vpop.f32.mrb[5].mxu1 }
 0x1af   :  { %v3526_v18 = vadd.f32 %v3525_v17, %v3524_v16  ;;  %v3527_v19 = vpop.f32.mrb[6].mxu1  ;;  %v1354_v16 = vld [vmem:[#allocation4 + $0x490] sm:$0xff] }
 0x1b0   :  { %v3528_v20 = vpop.f32.mrb[7].mxu1  ;;  %v1366_v17 = vld [vmem:[#allocation4 + $0x4f0] sm:$0xff] }
 0x1b1   :  { %v1119_v21 = vadd.f32 %v3526_v18, %v1078_v13  ;;  %v3529_v22 = vadd.f32 %v3528_v20, %v3527_v19  ;;  %v3351_v13 = vcombine.low %v1307_v2, %v1319_v3  ;;  %v1355_v18 = vld [vmem:[#allocation4 + $0x498] sm:$0xff]  ;;  %v3373_v20 = vcombine.low %v1330_v8, %v1342_v9  ;;  %v1308_v2 = vld [vmem:[#allocation4 + $0x320] sm:$0xff] }
 0x1b2   :  { %v1367_v19 = vld [vmem:[#allocation4 + $0x4f8] sm:$0xff]  ;;  %v1320_v3 = vld [vmem:[#allocation4 + $0x380] sm:$0xff] }
 0x1b3   :  { %v1122_v23 = vadd.f32 %v3529_v22, %v1081_v15  ;;  %v3376_v15 = vcombine.high %v1331_v10, %v1343_v11  ;;  %v3398_v22 = vcombine.high %v1354_v16, %v1366_v17  ;;  %v3354_v8 = vcombine.high %v1308_v2, %v1320_v3 }
 0x1c4   :  { %v3546_v24 = vpop.f32.mrb[8].mxu0 }
 0x1c5   :  { %v3547_v25 = vpop.f32.mrb[9].mxu0 }
 0x1c6   :  { %v3548_v26 = vadd.f32 %v3547_v25, %v3546_v24  ;;  %v3549_v27 = vpop.f32.mrb[10].mxu0  ;;  %v1378_v24 = vld [vmem:[#allocation4 + $0x550] sm:$0xff] }
 0x1c7   :  { %v3550_v28 = vpop.f32.mrb[11].mxu0  ;;  %v1390_v25 = vld [vmem:[#allocation4 + $0x5b0] sm:$0xff] }
 0x1c8   :  { %v1160_v29 = vadd.f32 %v3548_v26, %v1119_v21  ;;  %v3551_v30 = vadd.f32 %v3550_v28, %v3549_v27  ;;  %v3375_v21 = vcombine.low %v1331_v10, %v1343_v11  ;;  %v1379_v26 = vld [vmem:[#allocation4 + $0x558] sm:$0xff]  ;;  %v3397_v28 = vcombine.low %v1354_v16, %v1366_v17  ;;  %v1332_v10 = vld [vmem:[#allocation4 + $0x3e0] sm:$0xff] }
 0x1c9   :  { %v1391_v27 = vld [vmem:[#allocation4 + $0x5b8] sm:$0xff]  ;;  %v1344_v11 = vld [vmem:[#allocation4 + $0x440] sm:$0xff] }
 0x1ca   :  { %v1163_v31 = vadd.f32 %v3551_v30, %v1122_v23  ;;  %v3400_v23 = vcombine.high %v1355_v18, %v1367_v19  ;;  %v3422_v30 = vcombine.high %v1378_v24, %v1390_v25  ;;  %v3378_v16 = vcombine.high %v1332_v10, %v1344_v11 }
 0x1cd   :  { %v3568_v32 = vpop.f32.mrb[8].mxu1 }
 0x1ce   :  { %v3569_v33 = vpop.f32.mrb[9].mxu1 }
 0x1cf   :  { %v3570_v34 = vadd.f32 %v3569_v33, %v3568_v32  ;;  %v3571_v35 = vpop.f32.mrb[10].mxu1  ;;  %v1212_v32 = vld [vmem:[#allocation4 + $0x20] sm:$0xff] }
 0x1d0   :  { %v3572_v36 = vpop.f32.mrb[11].mxu1  ;;  %v1224_v33 = vld [vmem:[#allocation4 + $0x80] sm:$0xff] }
 0x1d1   :  { %v1201_v37 = vadd.f32 %v3570_v34, %v1160_v29  ;;  %v3573_v38 = vadd.f32 %v3572_v36, %v3571_v35  ;;  %v3399_v29 = vcombine.low %v1355_v18, %v1367_v19  ;;  %v1213_v34 = vld [vmem:[#allocation4 + $0x28] sm:$0xff]  ;;  %v3421_v36 = vcombine.low %v1378_v24, %v1390_v25  ;;  %v1356_v18 = vld [vmem:[#allocation4 + $0x4a0] sm:$0xff] }
 0x1d2   :  { %v1225_v35 = vld [vmem:[#allocation4 + $0x88] sm:$0xff]  ;;  %v1368_v19 = vld [vmem:[#allocation4 + $0x500] sm:$0xff] }
 0x1d3   :  { %v1204_v43 = vadd.f32 %v3573_v38, %v1163_v31  ;;  %v3424_v31 = vcombine.high %v1379_v26, %v1391_v27  ;;  %v3258_v38 = vcombine.high %v1212_v32, %v1224_v33  ;;  %v3260_v39 = vcombine.high %v1213_v34, %v1225_v35 }
 0x1d4   :  { %v3402_v24 = vcombine.high %v1356_v18, %v1368_v19 }
 0x1d5   :  { %v3925_v44 = vpack.c.bf16 %v1204_v43, %v1201_v37  ;;  %v3423_v37 = vcombine.low %v1379_v26, %v1391_v27  ;;  %v1249_v43 = vld [vmem:[#allocation4 + $0x148] sm:$0xff]  ;;  %v1380_v26 = vld [vmem:[#allocation4 + $0x560] sm:$0xff] }
 0x1d6   :  { %v3284_v51 = vcombine.high %v1237_v42, %v1249_v43  ;;  %v1392_v27 = vld [vmem:[#allocation4 + $0x5c0] sm:$0xff] }
 0x1d7   :  { %2519 = vmatmul.mubr.bf16.vlgmr.msra.gmra.mrb[12].mxu0 %v3925_v44  ;;  %2562 = vmatmul.mubr.bf16.vlgmr.msra.gmra.mrb[12].mxu1 %v3925_v44 }
 0x1d8   :  { %2573 = vmatpush1.bf16.msra.mxu0 %v3253_v54  ;;  %2616 = vmatpush1.bf16.msra.mxu1 %v3255_v55  ;;  %v1306_v54 = vld [vmem:[#allocation4 + $0x310] sm:$0xff] }
 0x1d9   :  { %2574 = vmatprep.subr.bf16.mxu0 %v3278_v45  ;;  %2617 = vmatprep.subr.bf16.mxu1 %v3280_v46  ;;  %v1318_v55 = vld [vmem:[#allocation4 + $0x370] sm:$0xff]  ;;  %v3257_v45 = vcombine.low %v1212_v32, %v1224_v33  ;;  %v3259_v46 = vcombine.low %v1213_v34, %v1225_v35  ;;  %v3426_v32 = vcombine.high %v1380_v26, %v1392_v27 }
 0x1da   :  { %2604 = vmatprep.mubr.bf16.mxu0 %v3763_v1  ;;  %2647 = vmatprep.mubr.bf16.mxu1 %v3763_v1  ;;  %v3350_v6 = vcombine.high %v1306_v54, %v1318_v55  ;;  %v3349_v12 = vcombine.low %v1306_v54, %v1318_v55  ;;  %v3330_v54 = vcombine.high %v1284_v63, %v1296_v0  ;;  %v1214_v34 = vld [vmem:[#allocation4 + $0x30] sm:$0xff] }
 0x1db   :  { %v1226_v35 = vld [vmem:[#allocation4 + $0x90] sm:$0xff] }
 0x1dc   :  { %2575 = vmatpush1.bf16.msra.mxu0 %v3277_v57  ;;  %2618 = vmatpush1.bf16.msra.mxu1 %v3279_v58  ;;  %v1261_v57 = vld [vmem:[#allocation4 + $0x1a8] sm:$0xff] }
 0x1dd   :  { %2576 = vmatprep.subr.bf16.mxu0 %v3302_v59  ;;  %2619 = vmatprep.subr.bf16.mxu1 %v3304_v60  ;;  %v1273_v58 = vld [vmem:[#allocation4 + $0x208] sm:$0xff]  ;;  %v3281_v59 = vcombine.low %v1236_v40, %v1248_v41  ;;  %v3283_v60 = vcombine.low %v1237_v42, %v1249_v43  ;;  %v3262_v40 = vcombine.high %v1214_v34, %v1226_v35  ;;  %v1238_v42 = vld [vmem:[#allocation4 + $0xf0] sm:$0xff] }
 0x1de   :  { %v3308_v62 = vcombine.high %v1261_v57, %v1273_v58  ;;  %v1250_v43 = vld [vmem:[#allocation4 + $0x150] sm:$0xff] }
 0x1e0   :  { %2577 = vmatpush1.bf16.msra.mxu0 %v3301_v47  ;;  %2620 = vmatpush1.bf16.msra.mxu1 %v3303_v48  ;;  %v1285_v47 = vld [vmem:[#allocation4 + $0x268] sm:$0xff] }
 0x1e1   :  { %2578 = vmatprep.subr.bf16.mxu0 %v3326_v49  ;;  %2621 = vmatprep.subr.bf16.mxu1 %v3328_v53  ;;  %v1297_v48 = vld [vmem:[#allocation4 + $0x2c8] sm:$0xff]  ;;  %v3305_v49 = vcombine.low %v1260_v52, %v1272_v56  ;;  %v3307_v53 = vcombine.low %v1261_v57, %v1273_v58  ;;  %v3286_v52 = vcombine.high %v1238_v42, %v1250_v43  ;;  %v1262_v57 = vld [vmem:[#allocation4 + $0x1b0] sm:$0xff] }
 0x1e2   :  { %v3332_v55 = vcombine.high %v1285_v47, %v1297_v48  ;;  %v1274_v58 = vld [vmem:[#allocation4 + $0x210] sm:$0xff] }
 0x1e4   :  { %2579 = vmatpush1.bf16.msra.mxu0 %v3325_v4  ;;  %2622 = vmatpush1.bf16.msra.mxu1 %v3327_v5  ;;  %v1309_v4 = vld [vmem:[#allocation4 + $0x328] sm:$0xff] }
 0x1e5   :  { %2580 = vmatprep.subr.bf16.mxu0 %v3350_v6  ;;  %2623 = vmatprep.subr.bf16.mxu1 %v3352_v7  ;;  %v1321_v5 = vld [vmem:[#allocation4 + $0x388] sm:$0xff]  ;;  %v3329_v6 = vcombine.low %v1284_v63, %v1296_v0  ;;  %v3331_v7 = vcombine.low %v1285_v47, %v1297_v48  ;;  %v3310_v63 = vcombine.high %v1262_v57, %v1274_v58  ;;  %v1286_v47 = vld [vmem:[#allocation4 + $0x270] sm:$0xff] }
 0x1e6   :  { %v3356_v9 = vcombine.high %v1309_v4, %v1321_v5  ;;  %v1298_v48 = vld [vmem:[#allocation4 + $0x2d0] sm:$0xff] }
 0x1e8   :  { %2581 = vmatpush1.bf16.msra.mxu0 %v3349_v12  ;;  %2624 = vmatpush1.bf16.msra.mxu1 %v3351_v13  ;;  %v1333_v12 = vld [vmem:[#allocation4 + $0x3e8] sm:$0xff] }
 0x1e9   :  { %2582 = vmatprep.subr.bf16.mxu0 %v3374_v14  ;;  %2625 = vmatprep.subr.bf16.mxu1 %v3376_v15  ;;  %v1345_v13 = vld [vmem:[#allocation4 + $0x448] sm:$0xff]  ;;  %v3353_v14 = vcombine.low %v1308_v2, %v1320_v3  ;;  %v3355_v15 = vcombine.low %v1309_v4, %v1321_v5  ;;  %v3334_v2 = vcombine.high %v1286_v47, %v1298_v48  ;;  %v1310_v4 = vld [vmem:[#allocation4 + $0x330] sm:$0xff] }
 0x1ea   :  { %v3380_v17 = vcombine.high %v1333_v12, %v1345_v13  ;;  %v1322_v5 = vld [vmem:[#allocation4 + $0x390] sm:$0xff] }
 0x1ec   :  { %2583 = vmatpush1.bf16.msra.mxu0 %v3373_v20  ;;  %2626 = vmatpush1.bf16.msra.mxu1 %v3375_v21  ;;  %v1357_v20 = vld [vmem:[#allocation4 + $0x4a8] sm:$0xff] }
 0x1ed   :  { %2584 = vmatprep.subr.bf16.mxu0 %v3398_v22  ;;  %2627 = vmatprep.subr.bf16.mxu1 %v3400_v23  ;;  %v1369_v21 = vld [vmem:[#allocation4 + $0x508] sm:$0xff]  ;;  %v3377_v22 = vcombine.low %v1332_v10, %v1344_v11  ;;  %v3379_v23 = vcombine.low %v1333_v12, %v1345_v13  ;;  %v3358_v10 = vcombine.high %v1310_v4, %v1322_v5  ;;  %v1334_v12 = vld [vmem:[#allocation4 + $0x3f0] sm:$0xff] }
 0x1ee   :  { %v3404_v25 = vcombine.high %v1357_v20, %v1369_v21  ;;  %v1346_v13 = vld [vmem:[#allocation4 + $0x450] sm:$0xff] }
 0x1f0   :  { %2585 = vmatpush1.bf16.msra.mxu0 %v3397_v28  ;;  %2628 = vmatpush1.bf16.msra.mxu1 %v3399_v29  ;;  %v1381_v28 = vld [vmem:[#allocation4 + $0x568] sm:$0xff] }
 0x1f1   :  { %2586 = vmatprep.subr.bf16.mxu0 %v3422_v30  ;;  %2629 = vmatprep.subr.bf16.mxu1 %v3424_v31  ;;  %v1393_v29 = vld [vmem:[#allocation4 + $0x5c8] sm:$0xff]  ;;  %v3401_v30 = vcombine.low %v1356_v18, %v1368_v19  ;;  %v3403_v31 = vcombine.low %v1357_v20, %v1369_v21  ;;  %v3382_v18 = vcombine.high %v1334_v12, %v1346_v13  ;;  %v1358_v20 = vld [vmem:[#allocation4 + $0x4b0] sm:$0xff] }
 0x1f2   :  { %v3428_v33 = vcombine.high %v1381_v28, %v1393_v29  ;;  %v1370_v21 = vld [vmem:[#allocation4 + $0x510] sm:$0xff] }
 0x1f4   :  { %2587 = vmatpush1.bf16.msra.mxu0 %v3421_v36  ;;  %2630 = vmatpush1.bf16.msra.mxu1 %v3423_v37  ;;  %v1215_v36 = vld [vmem:[#allocation4 + $0x38] sm:$0xff] }
 0x1f5   :  { %2658 = vmatprep.subr.bf16.mxu0 %v3258_v38  ;;  %2701 = vmatprep.subr.bf16.mxu1 %v3260_v39  ;;  %v1227_v37 = vld [vmem:[#allocation4 + $0x98] sm:$0xff]  ;;  %v3425_v38 = vcombine.low %v1380_v26, %v1392_v27  ;;  %v3427_v39 = vcombine.low %v1381_v28, %v1393_v29  ;;  %v3406_v26 = vcombine.high %v1358_v20, %v1370_v21  ;;  %v1382_v28 = vld [vmem:[#allocation4 + $0x570] sm:$0xff] }
 0x1f6   :  { %v3264_v41 = vcombine.high %v1215_v36, %v1227_v37  ;;  %v1394_v29 = vld [vmem:[#allocation4 + $0x5d0] sm:$0xff] }
 0x1f7   :  { %2605 = vmatmul.mubr.bf16.vlgmr.msra.gmra.mrb[16].mxu0 %v3925_v44  ;;  %2648 = vmatmul.mubr.bf16.vlgmr.msra.gmra.mrb[16].mxu1 %v3925_v44 }
 0x1f8   :  { %2659 = vmatpush1.bf16.msra.mxu0 %v3257_v45  ;;  %2702 = vmatpush1.bf16.msra.mxu1 %v3259_v46  ;;  %v1239_v45 = vld [vmem:[#allocation4 + $0xf8] sm:$0xff] }
 0x1f9   :  { %2660 = vmatprep.subr.bf16.mxu0 %v3282_v50  ;;  %2703 = vmatprep.subr.bf16.mxu1 %v3284_v51  ;;  %v1251_v46 = vld [vmem:[#allocation4 + $0x158] sm:$0xff]  ;;  %v3261_v50 = vcombine.low %v1214_v34, %v1226_v35  ;;  %v3263_v51 = vcombine.low %v1215_v36, %v1227_v37  ;;  %v3430_v34 = vcombine.high %v1382_v28, %v1394_v29  ;;  %v1216_v36 = vld [vmem:[#allocation4 + $0x40] sm:$0xff] }
 0x1fa   :  { %2690 = vmatprep.mubr.bf16.mxu0 %v3763_v1  ;;  %2733 = vmatprep.mubr.bf16.mxu1 %v3763_v1  ;;  %v3288_v56 = vcombine.high %v1239_v45, %v1251_v46  ;;  %v1228_v37 = vld [vmem:[#allocation4 + $0xa0] sm:$0xff] }
 0x1fc   :  { %2661 = vmatpush1.bf16.msra.mxu0 %v3281_v59  ;;  %2704 = vmatpush1.bf16.msra.mxu1 %v3283_v60  ;;  %v1263_v59 = vld [vmem:[#allocation4 + $0x1b8] sm:$0xff] }
 0x1fd   :  { %2662 = vmatprep.subr.bf16.mxu0 %v3306_v61  ;;  %2705 = vmatprep.subr.bf16.mxu1 %v3308_v62  ;;  %v1275_v60 = vld [vmem:[#allocation4 + $0x218] sm:$0xff]  ;;  %v3285_v61 = vcombine.low %v1238_v42, %v1250_v43  ;;  %v3287_v62 = vcombine.low %v1239_v45, %v1251_v46  ;;  %v3266_v42 = vcombine.high %v1216_v36, %v1228_v37  ;;  %v1240_v45 = vld [vmem:[#allocation4 + $0x100] sm:$0xff] }
 0x1fe   :  { %v3312_v0 = vcombine.high %v1263_v59, %v1275_v60  ;;  %v1252_v46 = vld [vmem:[#allocation4 + $0x160] sm:$0xff] }
 0x200   :  { %2663 = vmatpush1.bf16.msra.mxu0 %v3305_v49  ;;  %2706 = vmatpush1.bf16.msra.mxu1 %v3307_v53  ;;  %v1287_v49 = vld [vmem:[#allocation4 + $0x278] sm:$0xff] }
 0x201   :  { %2664 = vmatprep.subr.bf16.mxu0 %v3330_v54  ;;  %2707 = vmatprep.subr.bf16.mxu1 %v3332_v55  ;;  %v1299_v53 = vld [vmem:[#allocation4 + $0x2d8] sm:$0xff]  ;;  %v3309_v54 = vcombine.low %v1262_v57, %v1274_v58  ;;  %v3311_v55 = vcombine.low %v1263_v59, %v1275_v60  ;;  %v3290_v57 = vcombine.high %v1240_v45, %v1252_v46  ;;  %v1264_v59 = vld [vmem:[#allocation4 + $0x1c0] sm:$0xff] }
 0x202   :  { %v3336_v3 = vcombine.high %v1287_v49, %v1299_v53  ;;  %v1276_v60 = vld [vmem:[#allocation4 + $0x220] sm:$0xff] }
 0x204   :  { %2665 = vmatpush1.bf16.msra.mxu0 %v3329_v6  ;;  %2708 = vmatpush1.bf16.msra.mxu1 %v3331_v7  ;;  %v1311_v6 = vld [vmem:[#allocation4 + $0x338] sm:$0xff] }
 0x205   :  { %2666 = vmatprep.subr.bf16.mxu0 %v3354_v8  ;;  %2709 = vmatprep.subr.bf16.mxu1 %v3356_v9  ;;  %v1323_v7 = vld [vmem:[#allocation4 + $0x398] sm:$0xff]  ;;  %v3333_v8 = vcombine.low %v1286_v47, %v1298_v48  ;;  %v3335_v9 = vcombine.low %v1287_v49, %v1299_v53  ;;  %v3314_v47 = vcombine.high %v1264_v59, %v1276_v60  ;;  %v1288_v49 = vld [vmem:[#allocation4 + $0x280] sm:$0xff] }
 0x206   :  { %v3360_v11 = vcombine.high %v1311_v6, %v1323_v7  ;;  %v1300_v53 = vld [vmem:[#allocation4 + $0x2e0] sm:$0xff] }
 0x208   :  { %2667 = vmatpush1.bf16.msra.mxu0 %v3353_v14  ;;  %2710 = vmatpush1.bf16.msra.mxu1 %v3355_v15  ;;  %v1335_v14 = vld [vmem:[#allocation4 + $0x3f8] sm:$0xff] }
 0x209   :  { %2668 = vmatprep.subr.bf16.mxu0 %v3378_v16  ;;  %2711 = vmatprep.subr.bf16.mxu1 %v3380_v17  ;;  %v1347_v15 = vld [vmem:[#allocation4 + $0x458] sm:$0xff]  ;;  %v3357_v16 = vcombine.low %v1310_v4, %v1322_v5  ;;  %v3359_v17 = vcombine.low %v1311_v6, %v1323_v7  ;;  %v3338_v4 = vcombine.high %v1288_v49, %v1300_v53  ;;  %v1312_v6 = vld [vmem:[#allocation4 + $0x340] sm:$0xff] }
 0x20a   :  { %v3384_v19 = vcombine.high %v1335_v14, %v1347_v15  ;;  %v1324_v7 = vld [vmem:[#allocation4 + $0x3a0] sm:$0xff] }
 0x20c   :  { %2669 = vmatpush1.bf16.msra.mxu0 %v3377_v22  ;;  %2712 = vmatpush1.bf16.msra.mxu1 %v3379_v23  ;;  %v1359_v22 = vld [vmem:[#allocation4 + $0x4b8] sm:$0xff] }
 0x20d   :  { %2670 = vmatprep.subr.bf16.mxu0 %v3402_v24  ;;  %2713 = vmatprep.subr.bf16.mxu1 %v3404_v25  ;;  %v1371_v23 = vld [vmem:[#allocation4 + $0x518] sm:$0xff]  ;;  %v3381_v24 = vcombine.low %v1334_v12, %v1346_v13  ;;  %v3383_v25 = vcombine.low %v1335_v14, %v1347_v15  ;;  %v3362_v12 = vcombine.high %v1312_v6, %v1324_v7  ;;  %v1336_v14 = vld [vmem:[#allocation4 + $0x400] sm:$0xff] }
 0x20e   :  { %v3408_v27 = vcombine.high %v1359_v22, %v1371_v23  ;;  %v1348_v15 = vld [vmem:[#allocation4 + $0x460] sm:$0xff] }
 0x210   :  { %2671 = vmatpush1.bf16.msra.mxu0 %v3401_v30  ;;  %2714 = vmatpush1.bf16.msra.mxu1 %v3403_v31  ;;  %v1383_v30 = vld [vmem:[#allocation4 + $0x578] sm:$0xff] }
 0x211   :  { %2672 = vmatprep.subr.bf16.mxu0 %v3426_v32  ;;  %2715 = vmatprep.subr.bf16.mxu1 %v3428_v33  ;;  %v1395_v31 = vld [vmem:[#allocation4 + $0x5d8] sm:$0xff]  ;;  %v3405_v32 = vcombine.low %v1358_v20, %v1370_v21  ;;  %v3407_v33 = vcombine.low %v1359_v22, %v1371_v23  ;;  %v3386_v20 = vcombine.high %v1336_v14, %v1348_v15  ;;  %v1360_v22 = vld [vmem:[#allocation4 + $0x4c0] sm:$0xff] }
 0x212   :  { %v3432_v35 = vcombine.high %v1383_v30, %v1395_v31  ;;  %v1372_v23 = vld [vmem:[#allocation4 + $0x520] sm:$0xff] }
 0x214   :  { %2673 = vmatpush1.bf16.msra.mxu0 %v3425_v38  ;;  %2716 = vmatpush1.bf16.msra.mxu1 %v3427_v39  ;;  %v1217_v38 = vld [vmem:[#allocation4 + $0x48] sm:$0xff] }
 0x215   :  { %2744 = vmatprep.subr.bf16.mxu0 %v3262_v40  ;;  %2787 = vmatprep.subr.bf16.mxu1 %v3264_v41  ;;  %v1229_v39 = vld [vmem:[#allocation4 + $0xa8] sm:$0xff]  ;;  %v3429_v40 = vcombine.low %v1382_v28, %v1394_v29  ;;  %v3431_v41 = vcombine.low %v1383_v30, %v1395_v31  ;;  %v3410_v28 = vcombine.high %v1360_v22, %v1372_v23  ;;  %v1384_v30 = vld [vmem:[#allocation4 + $0x580] sm:$0xff] }
 0x216   :  { %v3268_v43 = vcombine.high %v1217_v38, %v1229_v39  ;;  %v1396_v31 = vld [vmem:[#allocation4 + $0x5e0] sm:$0xff] }
 0x217   :  { %2691 = vmatmul.mubr.bf16.vlgmr.msra.gmra.mrb[20].mxu0 %v3925_v44  ;;  %2734 = vmatmul.mubr.bf16.vlgmr.msra.gmra.mrb[20].mxu1 %v3925_v44 }
 0x218   :  { %2745 = vmatpush1.bf16.msra.mxu0 %v3261_v50  ;;  %2788 = vmatpush1.bf16.msra.mxu1 %v3263_v51  ;;  %v1241_v50 = vld [vmem:[#allocation4 + $0x108] sm:$0xff] }
 0x219   :  { %2746 = vmatprep.subr.bf16.mxu0 %v3286_v52  ;;  %2789 = vmatprep.subr.bf16.mxu1 %v3288_v56  ;;  %v1253_v51 = vld [vmem:[#allocation4 + $0x168] sm:$0xff]  ;;  %v3265_v52 = vcombine.low %v1216_v36, %v1228_v37  ;;  %v3267_v56 = vcombine.low %v1217_v38, %v1229_v39  ;;  %v3434_v36 = vcombine.high %v1384_v30, %v1396_v31  ;;  %v1218_v38 = vld [vmem:[#allocation4 + $0x50] sm:$0xff] }
 0x21a   :  { %2776 = vmatprep.mubr.bf16.mxu0 %v3763_v1  ;;  %2819 = vmatprep.mubr.bf16.mxu1 %v3763_v1  ;;  %v3292_v58 = vcombine.high %v1241_v50, %v1253_v51  ;;  %v1230_v39 = vld [vmem:[#allocation4 + $0xb0] sm:$0xff] }
 0x21c   :  { %2747 = vmatpush1.bf16.msra.mxu0 %v3285_v61  ;;  %2790 = vmatpush1.bf16.msra.mxu1 %v3287_v62  ;;  %v1265_v61 = vld [vmem:[#allocation4 + $0x1c8] sm:$0xff] }
 0x21d   :  { %2748 = vmatprep.subr.bf16.mxu0 %v3310_v63  ;;  %2791 = vmatprep.subr.bf16.mxu1 %v3312_v0  ;;  %v1277_v62 = vld [vmem:[#allocation4 + $0x228] sm:$0xff]  ;;  %v3289_v63 = vcombine.low %v1240_v45, %v1252_v46  ;;  %v3291_v0 = vcombine.low %v1241_v50, %v1253_v51  ;;  %v3270_v45 = vcombine.high %v1218_v38, %v1230_v39  ;;  %v1242_v50 = vld [vmem:[#allocation4 + $0x110] sm:$0xff] }
 0x21e   :  { %v3316_v48 = vcombine.high %v1265_v61, %v1277_v62  ;;  %v1254_v51 = vld [vmem:[#allocation4 + $0x170] sm:$0xff] }
 0x220   :  { %2749 = vmatpush1.bf16.msra.mxu0 %v3309_v54  ;;  %2792 = vmatpush1.bf16.msra.mxu1 %v3311_v55  ;;  %v1289_v54 = vld [vmem:[#allocation4 + $0x288] sm:$0xff] }
 0x221   :  { %2750 = vmatprep.subr.bf16.mxu0 %v3334_v2  ;;  %2793 = vmatprep.subr.bf16.mxu1 %v3336_v3  ;;  %v1301_v55 = vld [vmem:[#allocation4 + $0x2e8] sm:$0xff]  ;;  %v3313_v2 = vcombine.low %v1264_v59, %v1276_v60  ;;  %v3315_v3 = vcombine.low %v1265_v61, %v1277_v62  ;;  %v3294_v59 = vcombine.high %v1242_v50, %v1254_v51  ;;  %v1266_v61 = vld [vmem:[#allocation4 + $0x1d0] sm:$0xff] }
 0x222   :  { %v3340_v5 = vcombine.high %v1289_v54, %v1301_v55  ;;  %v1278_v62 = vld [vmem:[#allocation4 + $0x230] sm:$0xff] }
 0x224   :  { %2751 = vmatpush1.bf16.msra.mxu0 %v3333_v8  ;;  %2794 = vmatpush1.bf16.msra.mxu1 %v3335_v9  ;;  %v1313_v8 = vld [vmem:[#allocation4 + $0x348] sm:$0xff] }
 0x225   :  { %2752 = vmatprep.subr.bf16.mxu0 %v3358_v10  ;;  %2795 = vmatprep.subr.bf16.mxu1 %v3360_v11  ;;  %v1325_v9 = vld [vmem:[#allocation4 + $0x3a8] sm:$0xff]  ;;  %v3337_v10 = vcombine.low %v1288_v49, %v1300_v53  ;;  %v3339_v11 = vcombine.low %v1289_v54, %v1301_v55  ;;  %v3318_v49 = vcombine.high %v1266_v61, %v1278_v62  ;;  %v1290_v54 = vld [vmem:[#allocation4 + $0x290] sm:$0xff] }
 0x226   :  { %v3364_v13 = vcombine.high %v1313_v8, %v1325_v9  ;;  %v1302_v55 = vld [vmem:[#allocation4 + $0x2f0] sm:$0xff] }
 0x228   :  { %2753 = vmatpush1.bf16.msra.mxu0 %v3357_v16  ;;  %2796 = vmatpush1.bf16.msra.mxu1 %v3359_v17  ;;  %v1337_v16 = vld [vmem:[#allocation4 + $0x408] sm:$0xff] }
 0x229   :  { %2754 = vmatprep.subr.bf16.mxu0 %v3382_v18  ;;  %2797 = vmatprep.subr.bf16.mxu1 %v3384_v19  ;;  %v1349_v17 = vld [vmem:[#allocation4 + $0x468] sm:$0xff]  ;;  %v3361_v18 = vcombine.low %v1312_v6, %v1324_v7  ;;  %v3363_v19 = vcombine.low %v1313_v8, %v1325_v9  ;;  %v3342_v6 = vcombine.high %v1290_v54, %v1302_v55  ;;  %v1314_v8 = vld [vmem:[#allocation4 + $0x350] sm:$0xff] }
 0x22a   :  { %v3388_v21 = vcombine.high %v1337_v16, %v1349_v17  ;;  %v1326_v9 = vld [vmem:[#allocation4 + $0x3b0] sm:$0xff] }
 0x22c   :  { %2755 = vmatpush1.bf16.msra.mxu0 %v3381_v24  ;;  %2798 = vmatpush1.bf16.msra.mxu1 %v3383_v25  ;;  %v1361_v24 = vld [vmem:[#allocation4 + $0x4c8] sm:$0xff] }
 0x22d   :  { %2756 = vmatprep.subr.bf16.mxu0 %v3406_v26  ;;  %2799 = vmatprep.subr.bf16.mxu1 %v3408_v27  ;;  %v1373_v25 = vld [vmem:[#allocation4 + $0x528] sm:$0xff]  ;;  %v3385_v26 = vcombine.low %v1336_v14, %v1348_v15  ;;  %v3387_v27 = vcombine.low %v1337_v16, %v1349_v17  ;;  %v3366_v14 = vcombine.high %v1314_v8, %v1326_v9  ;;  %v1338_v15 = vld [vmem:[#allocation4 + $0x410] sm:$0xff]  ;;  %v1339_v17 = vld [vmem:[#allocation4 + $0x418] sm:$0xff] }
 0x22e   :  { %v3412_v29 = vcombine.high %v1361_v24, %v1373_v25  ;;  %v1350_v16 = vld [vmem:[#allocation4 + $0x470] sm:$0xff] }
 0x230   :  { %2757 = vmatpush1.bf16.msra.mxu0 %v3405_v32  ;;  %2800 = vmatpush1.bf16.msra.mxu1 %v3407_v33  ;;  %v1385_v32 = vld [vmem:[#allocation4 + $0x588] sm:$0xff] }
 0x231   :  { %2758 = vmatprep.subr.bf16.mxu0 %v3430_v34  ;;  %2801 = vmatprep.subr.bf16.mxu1 %v3432_v35  ;;  %v1397_v33 = vld [vmem:[#allocation4 + $0x5e8] sm:$0xff]  ;;  %v3409_v34 = vcombine.low %v1360_v22, %v1372_v23  ;;  %v3411_v35 = vcombine.low %v1361_v24, %v1373_v25  ;;  %v1362_v23 = vld [vmem:[#allocation4 + $0x4d0] sm:$0xff]  ;;  %v1363_v25 = vld [vmem:[#allocation4 + $0x4d8] sm:$0xff] }
 0x232   :  { %v3436_v37 = vcombine.high %v1385_v32, %v1397_v33  ;;  %v1374_v24 = vld [vmem:[#allocation4 + $0x530] sm:$0xff] }
 0x234   :  { %2759 = vmatpush1.bf16.msra.mxu0 %v3429_v40  ;;  %2802 = vmatpush1.bf16.msra.mxu1 %v3431_v41  ;;  %v1219_v40 = vld [vmem:[#allocation4 + $0x58] sm:$0xff] }
 0x235   :  { %2830 = vmatprep.subr.bf16.mxu0 %v3266_v42  ;;  %2873 = vmatprep.subr.bf16.mxu1 %v3268_v43  ;;  %v1231_v41 = vld [vmem:[#allocation4 + $0xb8] sm:$0xff]  ;;  %v3433_v42 = vcombine.low %v1384_v30, %v1396_v31  ;;  %v3435_v43 = vcombine.low %v1385_v32, %v1397_v33  ;;  %v1386_v31 = vld [vmem:[#allocation4 + $0x590] sm:$0xff] }
 0x236   :  { %v3272_v46 = vcombine.high %v1219_v40, %v1231_v41  ;;  %v1398_v32 = vld [vmem:[#allocation4 + $0x5f0] sm:$0xff]  ;;  %v1387_v33 = vld [vmem:[#allocation4 + $0x598] sm:$0xff] }
 0x237   :  { %2777 = vmatmul.mubr.bf16.vlgmr.msra.gmra.mrb[24].mxu0 %v3925_v44  ;;  %2820 = vmatmul.mubr.bf16.vlgmr.msra.gmra.mrb[24].mxu1 %v3925_v44 }
 0x238   :  { %2831 = vmatpush1.bf16.msra.mxu0 %v3265_v52  ;;  %2874 = vmatpush1.bf16.msra.mxu1 %v3267_v56  ;;  %v1243_v52 = vld [vmem:[#allocation4 + $0x118] sm:$0xff] }
 0x239   :  { %2832 = vmatprep.subr.bf16.mxu0 %v3290_v57  ;;  %2875 = vmatprep.subr.bf16.mxu1 %v3292_v58  ;;  %v1255_v56 = vld [vmem:[#allocation4 + $0x178] sm:$0xff]  ;;  %v3269_v57 = vcombine.low %v1218_v38, %v1230_v39  ;;  %v3271_v58 = vcombine.low %v1219_v40, %v1231_v41  ;;  %v3437_v39 = vcombine.low %v1386_v31, %v1398_v32  ;;  %v1406_v41 = vlaneseq }
 0x23a   :  { %2862 = vmatprep.mubr.bf16.mxu0 %v3763_v1  ;;  %2905 = vmatprep.mubr.bf16.mxu1 %v3763_v1  ;;  %v3296_v60 = vcombine.high %v1243_v52, %v1255_v56 }
 0x23c   :  { %2833 = vmatpush1.bf16.msra.mxu0 %v3289_v63  ;;  %2876 = vmatpush1.bf16.msra.mxu1 %v3291_v0  ;;  %v1267_v63 = vld [vmem:[#allocation4 + $0x1d8] sm:$0xff] }
 0x23d   :  { %2834 = vmatprep.subr.bf16.mxu0 %v3314_v47  ;;  %2877 = vmatprep.subr.bf16.mxu1 %v3316_v48  ;;  %v1279_v0 = vld [vmem:[#allocation4 + $0x238] sm:$0xff]  ;;  %v3293_v47 = vcombine.low %v1242_v50, %v1254_v51  ;;  %v3295_v48 = vcombine.low %v1243_v52, %v1255_v56 }
 0x23e   :  { %v3320_v53 = vcombine.high %v1267_v63, %v1279_v0 }
 0x240   :  { %2835 = vmatpush1.bf16.msra.mxu0 %v3313_v2  ;;  %2878 = vmatpush1.bf16.msra.mxu1 %v3315_v3  ;;  %v1291_v2 = vld [vmem:[#allocation4 + $0x298] sm:$0xff] }
 0x241   :  { %2836 = vmatprep.subr.bf16.mxu0 %v3338_v4  ;;  %2879 = vmatprep.subr.bf16.mxu1 %v3340_v5  ;;  %v1303_v3 = vld [vmem:[#allocation4 + $0x2f8] sm:$0xff]  ;;  %v3317_v4 = vcombine.low %v1266_v61, %v1278_v62  ;;  %v3319_v5 = vcombine.low %v1267_v63, %v1279_v0 }
 0x242   :  { %v3344_v7 = vcombine.high %v1291_v2, %v1303_v3 }
 0x244   :  { %2837 = vmatpush1.bf16.msra.mxu0 %v3337_v10  ;;  %2880 = vmatpush1.bf16.msra.mxu1 %v3339_v11  ;;  %v1315_v10 = vld [vmem:[#allocation4 + $0x358] sm:$0xff] }
 0x245   :  { %2838 = vmatprep.subr.bf16.mxu0 %v3362_v12  ;;  %2881 = vmatprep.subr.bf16.mxu1 %v3364_v13  ;;  %v1327_v11 = vld [vmem:[#allocation4 + $0x3b8] sm:$0xff]  ;;  %v3341_v12 = vcombine.low %v1290_v54, %v1302_v55  ;;  %v3343_v13 = vcombine.low %v1291_v2, %v1303_v3 }
 0x248   :  { %2839 = vmatpush1.bf16.msra.mxu0 %v3361_v18  ;;  %2882 = vmatpush1.bf16.msra.mxu1 %v3363_v19  ;;  %v1351_v18 = vld [vmem:[#allocation4 + $0x478] sm:$0xff]  ;;  %v3365_v19 = vcombine.low %v1314_v8, %v1326_v9 }
 0x249   :  { %2840 = vmatprep.subr.bf16.mxu0 %v3386_v20  ;;  %2883 = vmatprep.subr.bf16.mxu1 %v3388_v21  ;;  %v3367_v20 = vcombine.low %v1315_v10, %v1327_v11  ;;  %v3390_v21 = vcombine.high %v1338_v15, %v1350_v16  ;;  %v3392_v22 = vcombine.high %v1339_v17, %v1351_v18 }
 0x24c   :  { %2841 = vmatpush1.bf16.msra.mxu0 %v3385_v26  ;;  %2884 = vmatpush1.bf16.msra.mxu1 %v3387_v27  ;;  %v1375_v26 = vld [vmem:[#allocation4 + $0x538] sm:$0xff]  ;;  %v3389_v27 = vcombine.low %v1338_v15, %v1350_v16 }
 0x24d   :  { %2842 = vmatprep.subr.bf16.mxu0 %v3410_v28  ;;  %2885 = vmatprep.subr.bf16.mxu1 %v3412_v29  ;;  %v3391_v28 = vcombine.low %v1339_v17, %v1351_v18  ;;  %v3414_v29 = vcombine.high %v1362_v23, %v1374_v24  ;;  %v3416_v30 = vcombine.high %v1363_v25, %v1375_v26 }
 0x250   :  { %2843 = vmatpush1.bf16.msra.mxu0 %v3409_v34  ;;  %2886 = vmatpush1.bf16.msra.mxu1 %v3411_v35  ;;  %v1399_v34 = vld [vmem:[#allocation4 + $0x5f8] sm:$0xff]  ;;  %v3413_v35 = vcombine.low %v1362_v23, %v1374_v24 }
 0x251   :  { %2844 = vmatprep.subr.bf16.mxu0 %v3434_v36  ;;  %2887 = vmatprep.subr.bf16.mxu1 %v3436_v37  ;;  %v3415_v36 = vcombine.low %v1363_v25, %v1375_v26  ;;  %v3438_v37 = vcombine.high %v1386_v31, %v1398_v32  ;;  %v3440_v38 = vcombine.high %v1387_v33, %v1399_v34 }
 0x252   :  { %v3439_v40 = vcombine.low %v1387_v33, %v1399_v34 }
 0x254   :  { %2845 = vmatpush1.bf16.msra.mxu0 %v3433_v42  ;;  %2888 = vmatpush1.bf16.msra.mxu1 %v3435_v43  ;;  %v1407_v42 = vshrl.u32 %v1406_v41, 7 }
 0x255   :  { %2916 = vmatprep.subr.bf16.mxu0 %v3270_v45  ;;  %2959 = vmatprep.subr.bf16.mxu1 %v3272_v46  ;;  %v1400_v45 = vld [vmem:[%s4023_s4] sm:$0xff] }
 0x256   :  { %v3955_v43 = vsub.s32 0, %v1407_v42  ;;  %v3960_v46 = vsub.s32 2, %v1407_v42  ;;  %v3962_v50 = vsub.s32 1, %v1407_v42  ;;  %v3964_v51 = vsub.s32 3, %v1407_v42 }
 0x257   :  { %2863 = vmatmul.mubr.bf16.vlgmr.msra.gmra.mrb[28].mxu0 %v3925_v44  ;;  %2906 = vmatmul.mubr.bf16.vlgmr.msra.gmra.mrb[28].mxu1 %v3925_v44  ;;  %v3970_v18 = vsub.s32 4, %v1407_v42 }
 0x258   :  { %2917 = vmatpush1.bf16.msra.mxu0 %v3269_v57  ;;  %2960 = vmatpush1.bf16.msra.mxu1 %v3271_v58  ;;  %v1409_v52 = vrot.slane %v1400_v45, %v3955_v43  ;;  %v1417_v56 = vrot.slane %v1400_v45, %v3960_v46 }
 0x259   :  { %2918 = vmatprep.subr.bf16.mxu0 %v3294_v59  ;;  %2961 = vmatprep.subr.bf16.mxu1 %v3296_v60  ;;  %v1421_v59 = vrot.slane %v1400_v45, %v3964_v51 }
 0x25a   :  { %2948 = vmatprep.mubr.bf16.mxu0 %v3763_v1  ;;  %2991 = vmatprep.mubr.bf16.mxu1 %v3763_v1  ;;  %v3368_v1 = vcombine.high %v1315_v10, %v1327_v11 }
 0x25c   :  { %2919 = vmatpush1.bf16.msra.mxu0 %v3293_v47  ;;  %2962 = vmatpush1.bf16.msra.mxu1 %v3295_v48 }
 0x25d   :  { %2920 = vmatprep.subr.bf16.mxu0 %v3318_v49  ;;  %2963 = vmatprep.subr.bf16.mxu1 %v3320_v53 }
 0x260   :  { %2921 = vmatpush1.bf16.msra.mxu0 %v3317_v4  ;;  %2964 = vmatpush1.bf16.msra.mxu1 %v3319_v5 }
 0x261   :  { %2922 = vmatprep.subr.bf16.mxu0 %v3342_v6  ;;  %2965 = vmatprep.subr.bf16.mxu1 %v3344_v7 }
 0x264   :  { %2923 = vmatpush1.bf16.msra.mxu0 %v3341_v12  ;;  %2966 = vmatpush1.bf16.msra.mxu1 %v3343_v13 }
 0x265   :  { %2924 = vmatprep.subr.bf16.mxu0 %v3366_v14  ;;  %2967 = vmatprep.subr.bf16.mxu1 %v3368_v1 }
 0x268   :  { %2925 = vmatpush1.bf16.msra.mxu0 %v3365_v19  ;;  %2968 = vmatpush1.bf16.msra.mxu1 %v3367_v20  ;;  %v3972_v19 = vsub.s32 5, %v1407_v42  ;;  %v3974_v20 = vsub.s32 6, %v1407_v42 }
 0x269   :  { %2926 = vmatprep.subr.bf16.mxu0 %v3390_v21  ;;  %2969 = vmatprep.subr.bf16.mxu1 %v3392_v22  ;;  %v1425_v21 = vrot.slane %v1400_v45, %v3970_v18  ;;  %v3977_v22 = vsub.s32 7, %v1407_v42 }
 0x26a   :  { %v1429_v23 = vrot.slane %v1400_v45, %v3972_v19  ;;  %v1433_v24 = vrot.slane %v1400_v45, %v3974_v20 }
 0x26c   :  { %2927 = vmatpush1.bf16.msra.mxu0 %v3389_v27  ;;  %2970 = vmatpush1.bf16.msra.mxu1 %v3391_v28 }
 0x26d   :  { %2928 = vmatprep.subr.bf16.mxu0 %v3414_v29  ;;  %2971 = vmatprep.subr.bf16.mxu1 %v3416_v30  ;;  %v1437_v29 = vrot.slane %v1400_v45, %v3977_v22 }
 0x270   :  { %2929 = vmatpush1.bf16.msra.mxu0 %v3413_v35  ;;  %2972 = vmatpush1.bf16.msra.mxu1 %v3415_v36 }
 0x271   :  { %2930 = vmatprep.subr.bf16.mxu0 %v3438_v37  ;;  %2973 = vmatprep.subr.bf16.mxu1 %v3440_v38 }
 0x274   :  { %2931 = vmatpush1.bf16.msra.mxu0 %v3437_v39  ;;  %2974 = vmatpush1.bf16.msra.mxu1 %v3439_v40 }
 0x277   :  { %2949 = vmatmul.mubr.bf16.vlgmr.msra.gmra.mrb[32].mxu0 %v3925_v44  ;;  %2992 = vmatmul.mubr.bf16.vlgmr.msra.gmra.mrb[32].mxu1 %v3925_v44  ;;  %v1413_v44 = vrot.slane %v1400_v45, %v3962_v50 }
 0x2aa   :  { %v2520_v57 = vpop.f32.mrb[12].mxu0  ;;  %v2563_v58 = vpop.f32.mrb[12].mxu1 }
 0x2ab   :  { %v2521_v60 = vadd.f32 %v2520_v57, %v1409_v52  ;;  %v2522_v61 = vpop.f32.mrb[13].mxu0  ;;  %v2565_v62 = vpop.f32.mrb[13].mxu1  ;;  %v2564_v63 = vadd.f32 %v2563_v58, %v1417_v56 }
 0x2ac   :  { %v2523_v0 = vadd.f32 %v2522_v61, %v1413_v44  ;;  %v2524_v47 = vpop.f32.mrb[14].mxu0  ;;  %v2567_v48 = vpop.f32.mrb[14].mxu1  ;;  %v2566_v3 = vadd.f32 %v2565_v62, %v1421_v59 }
 0x2ad   :  { %v3002_v49 = vmax.f32 %v2521_v60, 0.0  ;;  %v2525_v53 = vadd.f32 %v2524_v47, %v1409_v52  ;;  %v2526_v54 = vpop.f32.mrb[15].mxu0  ;;  %v2569_v55 = vpop.f32.mrb[15].mxu1  ;;  %v2568_v4 = vadd.f32 %v2567_v48, %v1417_v56  ;;  %v3004_v7 = vmax.f32 %v2564_v63, 0.0 }
 0x2ae   :  { %v3003_v2 = vmax.f32 %v2523_v0, 0.0  ;;  %v2527_v5 = vadd.f32 %v2526_v54, %v1413_v44  ;;  %v2570_v10 = vadd.f32 %v2569_v55, %v1421_v59  ;;  %v3005_v11 = vmax.f32 %v2566_v3, 0.0 }
 0x2af   :  { %v3026_v6 = vmax.f32 %v2525_v53, 0.0  ;;  %v3028_v13 = vmax.f32 %v2568_v4, 0.0  ;;  %v1401_v53 = vld [vmem:[%s4023_s4 + $0x8] sm:$0xff] }
 0x2b0   :  { %v3051_v8 = vadd.f32 %v3003_v2, %v3002_v49  ;;  %v3027_v9 = vmax.f32 %v2527_v5, 0.0  ;;  %v3029_v15 = vmax.f32 %v2570_v10, 0.0  ;;  %v1441_v54 = vrot.slane %v1401_v53, %v3955_v43 }
 0x2b1   :  { %v1449_v55 = vrot.slane %v1401_v53, %v3960_v46  ;;  %v1445_v2 = vrot.slane %v1401_v53, %v3962_v50  ;;  %v1453_v5 = vrot.slane %v1401_v53, %v3964_v51 }
 0x2b2   :  { %v3052_v12 = vadd.f32 %v3051_v8, %v3004_v7  ;;  %v3060_v14 = vadd.f32 %v3027_v9, %v3026_v6 }
 0x2b4   :  { %v3053_v1 = vadd.f32 %v3052_v12, %v3005_v11  ;;  %v3061_v16 = vadd.f32 %v3060_v14, %v3028_v13 }
 0x2b6   :  { %v3062_v17 = vadd.f32 %v3061_v16, %v3029_v15 }
 0x2ca   :  { %v2606_v25 = vpop.f32.mrb[16].mxu0  ;;  %v2649_v26 = vpop.f32.mrb[16].mxu1 }
 0x2cb   :  { %v2607_v27 = vadd.f32 %v2606_v25, %v1425_v21  ;;  %v2608_v28 = vpop.f32.mrb[17].mxu0  ;;  %v2651_v30 = vpop.f32.mrb[17].mxu1  ;;  %v2650_v35 = vadd.f32 %v2649_v26, %v1433_v24 }
 0x2cc   :  { %v2609_v31 = vadd.f32 %v2608_v28, %v1429_v23  ;;  %v2610_v32 = vpop.f32.mrb[18].mxu0  ;;  %v2653_v33 = vpop.f32.mrb[18].mxu1  ;;  %v2652_v42 = vadd.f32 %v2651_v30, %v1437_v29 }
 0x2cd   :  { %v3006_v34 = vmax.f32 %v2607_v27, 0.0  ;;  %v2611_v36 = vadd.f32 %v2610_v32, %v1425_v21  ;;  %v2612_v37 = vpop.f32.mrb[19].mxu0  ;;  %v2655_v38 = vpop.f32.mrb[19].mxu1  ;;  %v2654_v56 = vadd.f32 %v2653_v33, %v1433_v24  ;;  %v3008_v57 = vmax.f32 %v2650_v35, 0.0 }
 0x2ce   :  { %v3007_v39 = vmax.f32 %v2609_v31, 0.0  ;;  %v2613_v40 = vadd.f32 %v2612_v37, %v1429_v23  ;;  %v2656_v45 = vadd.f32 %v2655_v38, %v1437_v29  ;;  %v3009_v60 = vmax.f32 %v2652_v42, 0.0 }
 0x2cf   :  { %v3054_v41 = vadd.f32 %v3053_v1, %v3006_v34  ;;  %v3030_v52 = vmax.f32 %v2611_v36, 0.0  ;;  %v3032_v61 = vmax.f32 %v2654_v56, 0.0  ;;  %v1457_v37 = vrot.slane %v1401_v53, %v3970_v18 }
 0x2d0   :  { %v3031_v44 = vmax.f32 %v2613_v40, 0.0  ;;  %v3033_v0 = vmax.f32 %v2656_v45, 0.0  ;;  %v1461_v38 = vrot.slane %v1401_v53, %v3972_v19  ;;  %v1469_v56 = vrot.slane %v1401_v53, %v3977_v22 }
 0x2d1   :  { %v3055_v58 = vadd.f32 %v3054_v41, %v3007_v39  ;;  %v3063_v59 = vadd.f32 %v3062_v17, %v3030_v52  ;;  %v1465_v39 = vrot.slane %v1401_v53, %v3974_v20 }
 0x2d3   :  { %v3064_v62 = vadd.f32 %v3063_v59, %v3031_v44  ;;  %v3056_v63 = vadd.f32 %v3055_v58, %v3008_v57 }
 0x2d5   :  { %v3057_v47 = vadd.f32 %v3056_v63, %v3009_v60  ;;  %v3065_v48 = vadd.f32 %v3064_v62, %v3032_v61 }
 0x2d7   :  { %3058 = vadd.xlane.f32.xlu1 %v3057_v47  ;;  %v3066_v49 = vadd.f32 %v3065_v48, %v3033_v0 }
 0x2d9   :  { %3067 = vadd.xlane.f32.xlu0 %v3066_v49 }
 0x2ea   :  { %v2692_v3 = vpop.f32.mrb[20].mxu0  ;;  %v2735_v4 = vpop.f32.mrb[20].mxu1 }
 0x2eb   :  { %v2693_v6 = vadd.f32 %v2692_v3, %v1441_v54  ;;  %v2694_v7 = vpop.f32.mrb[21].mxu0  ;;  %v2737_v8 = vpop.f32.mrb[21].mxu1  ;;  %v2736_v9 = vadd.f32 %v2735_v4, %v1449_v55 }
 0x2ec   :  { %v2695_v10 = vadd.f32 %v2694_v7, %v1445_v2  ;;  %v2696_v11 = vpop.f32.mrb[22].mxu0  ;;  %v2739_v12 = vpop.f32.mrb[22].mxu1  ;;  %v2738_v17 = vadd.f32 %v2737_v8, %v1453_v5 }
 0x2ed   :  { %v3010_v13 = vmax.f32 %v2693_v6, 0.0  ;;  %v2697_v14 = vadd.f32 %v2696_v11, %v1441_v54  ;;  %v2698_v1 = vpop.f32.mrb[23].mxu0  ;;  %v2741_v15 = vpop.f32.mrb[23].mxu1  ;;  %v2740_v21 = vadd.f32 %v2739_v12, %v1449_v55  ;;  %v3012_v25 = vmax.f32 %v2736_v9, 0.0 }
 0x2ee   :  { %v3011_v16 = vmax.f32 %v2695_v10, 0.0  ;;  %v2699_v23 = vadd.f32 %v2698_v1, %v1445_v2  ;;  %v2742_v28 = vadd.f32 %v2741_v15, %v1453_v5  ;;  %v3013_v29 = vmax.f32 %v2738_v17, 0.0 }
 0x2ef   :  { %v3034_v24 = vmax.f32 %v2697_v14, 0.0  ;;  %v3036_v31 = vmax.f32 %v2740_v21, 0.0  ;;  %v1402_v14 = vld [vmem:[%s4023_s4 + $0x10] sm:$0xff] }
 0x2f0   :  { %v3079_v26 = vadd.f32 %v3011_v16, %v3010_v13  ;;  %v3035_v27 = vmax.f32 %v2699_v23, 0.0  ;;  %v3037_v34 = vmax.f32 %v2742_v28, 0.0  ;;  %v1473_v1 = vrot.slane %v1402_v14, %v3955_v43 }
 0x2f1   :  { %v1481_v15 = vrot.slane %v1402_v14, %v3960_v46  ;;  %v1477_v16 = vrot.slane %v1402_v14, %v3962_v50  ;;  %v1485_v23 = vrot.slane %v1402_v14, %v3964_v51 }
 0x2f2   :  { %v3080_v30 = vadd.f32 %v3079_v26, %v3012_v25  ;;  %v3088_v32 = vadd.f32 %v3035_v27, %v3034_v24 }
 0x2f4   :  { %v3081_v33 = vadd.f32 %v3080_v30, %v3013_v29  ;;  %v3089_v35 = vadd.f32 %v3088_v32, %v3036_v31 }
 0x2f6   :  { %v3090_v36 = vadd.f32 %v3089_v35, %v3037_v34 }
 0x30a   :  { %v2778_v40 = vpop.f32.mrb[24].mxu0  ;;  %v2821_v41 = vpop.f32.mrb[24].mxu1 }
 0x30b   :  { %v2779_v42 = vadd.f32 %v2778_v40, %v1457_v37  ;;  %v2780_v52 = vpop.f32.mrb[25].mxu0  ;;  %v2823_v44 = vpop.f32.mrb[25].mxu1  ;;  %v2822_v60 = vadd.f32 %v2821_v41, %v1465_v39 }
 0x30c   :  { %v2781_v57 = vadd.f32 %v2780_v52, %v1461_v38  ;;  %v2782_v58 = vpop.f32.mrb[26].mxu0  ;;  %v2825_v59 = vpop.f32.mrb[26].mxu1  ;;  %v2824_v49 = vadd.f32 %v2823_v44, %v1469_v56 }
 0x30d   :  { %v3014_v45 = vmax.f32 %v2779_v42, 0.0  ;;  %v2783_v61 = vadd.f32 %v2782_v58, %v1457_v37  ;;  %v2784_v62 = vpop.f32.mrb[27].mxu0  ;;  %v2827_v63 = vpop.f32.mrb[27].mxu1  ;;  %v2826_v55 = vadd.f32 %v2825_v59, %v1465_v39  ;;  %v3016_v3 = vmax.f32 %v2822_v60, 0.0 }
 0x30e   :  { %v3015_v0 = vmax.f32 %v2781_v57, 0.0  ;;  %v2785_v47 = vadd.f32 %v2784_v62, %v1461_v38  ;;  %v2828_v53 = vadd.f32 %v2827_v63, %v1469_v56  ;;  %v3017_v6 = vmax.f32 %v2824_v49, 0.0 }
 0x30f   :  { %v3082_v48 = vadd.f32 %v3081_v33, %v3014_v45  ;;  %v3038_v54 = vmax.f32 %v2783_v61, 0.0  ;;  %v3040_v7 = vmax.f32 %v2826_v55, 0.0  ;;  %v1489_v61 = vrot.slane %v1402_v14, %v3970_v18 }
 0x310   :  { %v3039_v2 = vmax.f32 %v2785_v47, 0.0  ;;  %v3041_v10 = vmax.f32 %v2828_v53, 0.0  ;;  %v1493_v62 = vrot.slane %v1402_v14, %v3972_v19  ;;  %v1497_v63 = vrot.slane %v1402_v14, %v3974_v20 }
 0x311   :  { %v3083_v4 = vadd.f32 %v3082_v48, %v3015_v0  ;;  %v3091_v5 = vadd.f32 %v3090_v36, %v3038_v54  ;;  %v1501_v54 = vrot.slane %v1402_v14, %v3977_v22 }
 0x313   :  { %v3092_v8 = vadd.f32 %v3091_v5, %v3039_v2  ;;  %v3084_v9 = vadd.f32 %v3083_v4, %v3016_v3 }
 0x315   :  { %v3085_v11 = vadd.f32 %v3084_v9, %v3017_v6  ;;  %v3093_v12 = vadd.f32 %v3092_v8, %v3040_v7 }
 0x317   :  { %3086 = vadd.xlane.f32.xlu0 %v3085_v11  ;;  %v3094_v13 = vadd.f32 %v3093_v12, %v3041_v10 }
 0x319   :  { %3095 = vadd.xlane.f32.xlu1 %v3094_v13 }
 0x32a   :  { %v2864_v17 = vpop.f32.mrb[28].mxu0  ;;  %v2907_v21 = vpop.f32.mrb[28].mxu1 }
 0x32b   :  { %v2865_v24 = vadd.f32 %v2864_v17, %v1473_v1  ;;  %v2866_v25 = vpop.f32.mrb[29].mxu0  ;;  %v2909_v26 = vpop.f32.mrb[29].mxu1  ;;  %v2908_v27 = vadd.f32 %v2907_v21, %v1481_v15 }
 0x32c   :  { %v2867_v28 = vadd.f32 %v2866_v25, %v1477_v16  ;;  %v2868_v29 = vpop.f32.mrb[30].mxu0  ;;  %v2911_v30 = vpop.f32.mrb[30].mxu1  ;;  %v2910_v36 = vadd.f32 %v2909_v26, %v1485_v23 }
 0x32d   :  { %v3018_v31 = vmax.f32 %v2865_v24, 0.0  ;;  %v2869_v32 = vadd.f32 %v2868_v29, %v1473_v1  ;;  %v2870_v33 = vpop.f32.mrb[31].mxu0  ;;  %v2913_v34 = vpop.f32.mrb[31].mxu1  ;;  %v2912_v37 = vadd.f32 %v2911_v30, %v1481_v15  ;;  %v3020_v40 = vmax.f32 %v2908_v27, 0.0  ;;  %v3050_v30 = vld [vmem:[%s4024_s5] sm:$0x7] }
 0x32e   :  { %v3019_v35 = vmax.f32 %v2867_v28, 0.0  ;;  %v2871_v38 = vadd.f32 %v2870_v33, %v1477_v16  ;;  %v2914_v51 = vadd.f32 %v2913_v34, %v1485_v23  ;;  %v3021_v52 = vmax.f32 %v2910_v36, 0.0 }
 0x32f   :  { %v3042_v39 = vmax.f32 %v2869_v32, 0.0  ;;  %v3044_v44 = vmax.f32 %v2912_v37, 0.0  ;;  %v3102_v32 = vrot.slane %v3050_v30, %v3962_v50  ;;  %v3074_v34 = vrot.slane %v3050_v30, %v3955_v43  ;;  %v3441_v50 = vld [vmem:[%s4025_s6] ss:$0 sm:$0xff] }
 0x330   :  { %v3107_v41 = vadd.f32 %v3019_v35, %v3018_v31  ;;  %v3043_v42 = vmax.f32 %v2871_v38, 0.0  ;;  %v3045_v59 = vmax.f32 %v2914_v51, 0.0 }
 0x332   :  { %v3108_v56 = vadd.f32 %v3107_v41, %v3020_v40  ;;  %v3116_v57 = vadd.f32 %v3043_v42, %v3042_v39  ;;  %v3130_v39 = vrot.slane %v3050_v30, %v3960_v46 }
 0x334   :  { %v3109_v58 = vadd.f32 %v3108_v56, %v3021_v52  ;;  %v3117_v45 = vadd.f32 %v3116_v57, %v3044_v44 }
 0x336   :  { %v3118_v60 = vadd.f32 %v3117_v45, %v3045_v59 }
 0x34a   :  { %v2950_v0 = vpop.f32.mrb[32].mxu0  ;;  %v2993_v47 = vpop.f32.mrb[32].mxu1 }
 0x34b   :  { %v2951_v48 = vadd.f32 %v2950_v0, %v1489_v61  ;;  %v2952_v49 = vpop.f32.mrb[33].mxu0  ;;  %v2995_v55 = vpop.f32.mrb[33].mxu1  ;;  %v2994_v53 = vadd.f32 %v2993_v47, %v1497_v63 }
 0x34c   :  { %v2953_v2 = vadd.f32 %v2952_v49, %v1493_v62  ;;  %v2954_v3 = vpop.f32.mrb[34].mxu0  ;;  %v2997_v4 = vpop.f32.mrb[34].mxu1  ;;  %v2996_v10 = vadd.f32 %v2995_v55, %v1501_v54 }
 0x34d   :  { %v3022_v5 = vmax.f32 %v2951_v48, 0.0  ;;  %v2955_v6 = vadd.f32 %v2954_v3, %v1489_v61  ;;  %v2956_v7 = vpop.f32.mrb[35].mxu0  ;;  %v2999_v8 = vpop.f32.mrb[35].mxu1  ;;  %v2998_v11 = vadd.f32 %v2997_v4, %v1497_v63  ;;  %v3024_v13 = vmax.f32 %v2994_v53, 0.0 }
 0x34e   :  { %v3023_v18 = vmax.f32 %v2953_v2, 0.0  ;;  %v2957_v9 = vadd.f32 %v2956_v7, %v1493_v62  ;;  %v3000_v22 = vadd.f32 %v2999_v8, %v1501_v54  ;;  %v3025_v14 = vmax.f32 %v2996_v10, 0.0 }
 0x34f   :  { %v3110_v19 = vadd.f32 %v3109_v58, %v3022_v5  ;;  %v3046_v20 = vmax.f32 %v2955_v6, 0.0  ;;  %v3048_v16 = vmax.f32 %v2998_v11, 0.0 }
 0x350   :  { %v3047_v12 = vmax.f32 %v2957_v9, 0.0  ;;  %v3049_v23 = vmax.f32 %v3000_v22, 0.0 }
 0x351   :  { %v3111_v1 = vadd.f32 %v3110_v19, %v3023_v18  ;;  %v3119_v15 = vadd.f32 %v3118_v60, %v3046_v20 }
 0x353   :  { %v3120_v17 = vadd.f32 %v3119_v15, %v3047_v12  ;;  %v3112_v21 = vadd.f32 %v3111_v1, %v3024_v13 }
 0x355   :  { %v3113_v24 = vadd.f32 %v3112_v21, %v3025_v14  ;;  %v3121_v25 = vadd.f32 %v3120_v17, %v3048_v16 }
 0x357   :  { %3114 = vadd.xlane.f32.xlu0 %v3113_v24  ;;  %v3122_v26 = vadd.f32 %v3121_v25, %v3049_v23 }
 0x359   :  { %3123 = vadd.xlane.f32.xlu1 %v3122_v26 }
 0x364   :  { %v3059_v28 = vpop.xlane.xlu1 %3058 }
 0x365   :  { %v3069_v35 = vmul.f32 0.0009765625, %v3059_v28 }
 0x366   :  { %v3068_v27 = vpop.xlane.xlu0 %3067 }
 0x367   :  { %v3070_v37 = vmul.f32 0.0009765625, %v3068_v27  ;;  %v3075_v41 = vmul.f32 %v3074_v34, %v3069_v35 }
 0x369   :  { %v3076_v56 = vmul.f32 %v3074_v34, %v3070_v37 }
 0x3a4   :  { %v3087_v29 = vpop.xlane.xlu0 %3086 }
 0x3a5   :  { %v3097_v33 = vmul.f32 0.0009765625, %v3087_v29 }
 0x3a6   :  { %v3096_v31 = vpop.xlane.xlu1 %3095 }
 0x3a7   :  { %v3098_v36 = vmul.f32 0.0009765625, %v3096_v31  ;;  %v3103_v38 = vmul.f32 %v3102_v32, %v3097_v33 }
 0x3a9   :  { %v3104_v42 = vmul.f32 %v3102_v32, %v3098_v36  ;;  %v3105_v44 = vadd.f32 %v3103_v38, %v3075_v41 }
 0x3ab   :  { %v3106_v43 = vadd.f32 %v3104_v42, %v3076_v56 }
 0x3e4   :  { %v3115_v40 = vpop.xlane.xlu0 %3114 }
 0x3e5   :  { %v3125_v51 = vmul.f32 0.0009765625, %v3115_v40 }
 0x3e6   :  { %v3124_v52 = vpop.xlane.xlu1 %3123 }
 0x3e7   :  { %v3131_v57 = vmul.f32 %v3130_v39, %v3125_v51  ;;  %v3126_v58 = vmul.f32 0.0009765625, %v3124_v52 }
 0x3e9   :  { %v3133_v59 = vadd.f32 %v3131_v57, %v3105_v44  ;;  %v3132_v45 = vmul.f32 %v3130_v39, %v3126_v58 }
 0x3eb   :  { %v3142_v60 = vadd.f32 %v3441_v50, %v3133_v59  ;;  %v3134_v61 = vadd.f32 %v3132_v45, %v3106_v43 }
 0x3ed   :  { %3145 = vst.msk [vmem:[%s4026_s7] sm:$0xff] %vm3144_vm0, %v3142_v60  ;;  %v3143_v46 = vadd.f32 %v3441_v50, %v3134_v61 }
 0x3ef   :  { %3146 = vst.msk [vmem:[%s4026_s7 + $0x8] sm:$0xff] %vm3144_vm0, %v3143_v46 }
 0x3f0   :  { %3151 = vsyncpa [#allocation3], 1 }
 0x3f1   :  { %3152 = vsyncpa [#allocation5], 1 }

</bundles_post_ra>
